<compile_context>
chip_gen: v7x
topology: tpu7x:2x2x1
jax: 0.10.0
libtpu: 0.0.40
codegen_flags: <defaults>
</compile_context>

<pallas_src>
import functools

import jax
import jax.numpy as jnp
from jax.experimental import pallas as pl
from jax.experimental.pallas import tpu as pltpu


# ----------------------------------------------------------------------------
# Fused cascade-stage kernel.
#   inputs : cur [C,HW], res_sum [C,HW], w1 [C,9C], w2 [C,9C], ws [C,C],
#            wr [C,C], biases [C,4]
#   outputs: new_cur [C,HW], new_res_sum [C,HW]
# ----------------------------------------------------------------------------
def _stage_kernel(x_ref, rs_ref, w1_ref, w2_ref, ws_ref, wr_ref, b_ref,
                  cur_ref, nrs_ref, *, H, W, alpha):
    f32 = jnp.float32
    x = x_ref[...].astype(f32)      # [C, HW]  current data
    rs = rs_ref[...].astype(f32)    # [C, HW]  running sum(residual_connections)
    b = b_ref[...]                  # [C, 4]

    w_idx = jax.lax.broadcasted_iota(jnp.int32, x.shape, 1) % W
    first_col = w_idx == 0
    last_col = w_idx == (W - 1)

    def lrelu(v):
        return jnp.where(v >= 0, v, alpha * v)

    def conv3x3(a, w_ref):
        """Grouped 3x3 conv, reflect padding, built from in-VMEM lane shifts."""
        # Row (H) shifts; reflect: h=0 reads row 1, h=H-1 reads row H-2.
        up = jnp.concatenate([a[:, W:2 * W], a[:, :(H - 1) * W]], axis=1)        # h-1
        dn = jnp.concatenate([a[:, W:], a[:, (H - 2) * W:(H - 1) * W]], axis=1)  # h+1
        taps = []
        for ys in (up, a, dn):                                   # ky = 0, 1, 2
            sl = jnp.concatenate([ys[:, 1:], ys[:, :1]], axis=1)    # value at p+1
            sr = jnp.concatenate([ys[:, -1:], ys[:, :-1]], axis=1)  # value at p-1
            taps.append(jnp.where(first_col, sl, sr))   # kx=0: w-1 (reflect at w=0)
            taps.append(ys)                             # kx=1
            taps.append(jnp.where(last_col, sr, sl))    # kx=2: w+1 (reflect at w=W-1)
        patches = jnp.concatenate(taps, axis=0).astype(jnp.bfloat16)  # [9C, HW]
        return jnp.dot(w_ref[...], patches, preferred_element_type=f32)

    h = lrelu(conv3x3(x, w1_ref) + b[:, 0:1])                      # conv_1 + relu_1
    h = lrelu(conv3x3(h, w2_ref) + b[:, 1:2])                      # conv_2 + relu_2
    sc = jnp.dot(ws_ref[...], h.astype(jnp.bfloat16),
                 preferred_element_type=f32) + b[:, 2:3]           # single_conv
    bo = lrelu(x + sc)                                             # EResBlock output
    cur = jnp.dot(wr_ref[...], bo.astype(jnp.bfloat16),
                  preferred_element_type=f32) + b[:, 3:4] + rs     # residual_1d_conv + sum
    cur_ref[...] = cur.astype(cur_ref.dtype)
    nrs_ref[...] = (rs + bo).astype(nrs_ref.dtype)


def cascade_stage(cur, rs, w1m, w2m, wsm, wrm, b_stack, *, N, C, H, W, alpha):
    HW = H * W
    io_spec = pl.BlockSpec((C, HW), lambda i: (i, 0))

    def full(shape):
        return pl.BlockSpec(shape, lambda i: (0, 0))

    kernel = functools.partial(_stage_kernel, H=H, W=W, alpha=alpha)
    return pl.pallas_call(
        kernel,
        out_shape=(jax.ShapeDtypeStruct((N * C, HW), jnp.float32),
                   jax.ShapeDtypeStruct((N * C, HW), jnp.float32)),
        grid=(N,),
        in_specs=[io_spec, io_spec,
                  full((C, 9 * C)), full((C, 9 * C)),
                  full((C, C)), full((C, C)), full((C, 4))],
        out_specs=(io_spec, io_spec),
        compiler_params=pltpu.CompilerParams(dimension_semantics=("parallel",)),
    )(cur, rs, w1m, w2m, wsm, wrm, b_stack)


# ----------------------------------------------------------------------------
# Pallas-backed forward for the whole CascadingBlock
# ----------------------------------------------------------------------------
def cascading_block_pallas(x_nchw, params, alpha):
    N, C, H, W = x_nchw.shape
    assert C % 8 == 0 and (H * W) % 128 == 0, "demo kernel needs C%8==0, (H*W)%128==0"
    # TODO(synk): general shapes need wrapper-side padding to (8,128) tiles and,
    # for large images, spatial tiling with a 2-row halo per fused stage.
    x2 = x_nchw.reshape(N * C, H * W).astype(jnp.float32)
    cur, rs = x2, x2
    for ep, rp in zip(params["eres"], params["res_conv"]):
        b_stack = jnp.stack([ep["b1"], ep["b2"], ep["bs"], rp["b"]], axis=1)  # [C, 4]
        cur, rs = cascade_stage(cur, rs, ep["w1m"], ep["w2m"], ep["wsm"], rp["wm"],
                                b_stack, N=N, C=C, H=H, W=W, alpha=alpha)
    return cur.reshape(N, C, H, W)


# ----------------------------------------------------------------------------
# Parameter construction (weights packed for the channels-on-sublanes layout)
# ----------------------------------------------------------------------------
def grouped_w_to_matrix(w, groups):
    """[Cout, Cin/groups, 3, 3] -> [Cout, 9*Cin] tap-major (block-diag per group)."""
    cout, cpg, kh, kw = w.shape
    cin = cpg * groups
    opg = cout // groups
    mats = []
    for ky in range(kh):
        for kx in range(kw):
            tap = jnp.zeros((cin, cout), jnp.float32)
            for g in range(groups):
                blockw = w[g * opg:(g + 1) * opg, :, ky, kx]  # [opg, cpg]
                tap = tap.at[g * cpg:(g + 1) * cpg, g * opg:(g + 1) * opg].set(blockw.T)
            mats.append(tap)
    return jnp.concatenate(mats, axis=0).T  # [Cout, 9*Cin]


def init_conv(key, cout, cin_per_g, kh, kw):
    k1, k2 = jax.random.split(key)
    fan_in = cin_per_g * kh * kw
    bound = 1.0 / float(fan_in) ** 0.5
    w = jax.random.uniform(k1, (cout, cin_per_g, kh, kw), jnp.float32, -bound, bound)
    b = jax.random.uniform(k2, (cout,), jnp.float32, -bound, bound)
    return w, b


def build_params(key, C, groups, nb_blocks, shared_weights):
    cpg = C // groups
    keys = iter(jax.random.split(key, 4 * nb_blocks + 4))

    def eres_params():
        w1, b1 = init_conv(next(keys), C, cpg, 3, 3)
        w2, b2 = init_conv(next(keys), C, cpg, 3, 3)
        ws, bs = init_conv(next(keys), C, C, 1, 1)
        return dict(
            w1=w1, b1=b1, w2=w2, b2=b2, ws=ws, bs=bs,
            w1m=grouped_w_to_matrix(w1, groups).astype(jnp.bfloat16),
            w2m=grouped_w_to_matrix(w2, groups).astype(jnp.bfloat16),
            wsm=ws[:, :, 0, 0].astype(jnp.bfloat16),   # [cout, cin]
        )

    base = eres_params()
    eres = [base]
    for _ in range(1, nb_blocks):
        eres.append(base if shared_weights else eres_params())

    res_conv = []
    for _ in range(nb_blocks):
        wr, br = init_conv(next(keys), C, C, 1, 1)
        res_conv.append(dict(w=wr, b=br, wm=wr[:, :, 0, 0].astype(jnp.bfloat16)))
    return dict(eres=eres, res_conv=res_conv)


# ----------------------------------------------------------------------------
# Pure-JAX reference (mirrors the PyTorch module semantics, NCHW, f32)
# ----------------------------------------------------------------------------
def _lrelu(x, a):
    return jnp.where(x >= 0, x, a * x)


def _conv2d_ref(x, w, b, groups, reflect_pad):
    if reflect_pad:
        x = jnp.pad(x, ((0, 0), (0, 0), (1, 1), (1, 1)), mode="reflect")
    y = jax.lax.conv_general_dilated(
        x, w, (1, 1), "VALID",
        dimension_numbers=("NCHW", "OIHW", "NCHW"),
        feature_group_count=groups,
        precision=jax.lax.Precision.HIGHEST,
    )
    return y + b[None, :, None, None]


def _eres_ref(x, p, groups, a):
    h = _lrelu(_conv2d_ref(x, p["w1"], p["b1"], groups, True), a)
    h = _lrelu(_conv2d_ref(h, p["w2"], p["b2"], groups, True), a)
    return _lrelu(x + _conv2d_ref(h, p["ws"], p["bs"], 1, False), a)


def cascading_ref(x, params, groups, a):
    cur = x
    residuals = [x]
    for ep, rp in zip(params["eres"], params["res_conv"]):
        bo = _eres_ref(cur, ep, groups, a)
        cur = _conv2d_ref(bo, rp["w"], rp["b"], 1, False) + sum(residuals)
        residuals.append(bo)
    return cur


# ----------------------------------------------------------------------------
if __name__ == "__main__":
    N, C, H, W = 2, 8, 16, 16
    groups, nb_eres_blocks, alpha = 2, 2, 0.2
    shared_weights = True

    key = jax.random.PRNGKey(0)
    kx, kp = jax.random.split(key)
    x = jax.random.normal(kx, (N, C, H, W), jnp.float32)
    params = build_params(kp, C, groups, nb_eres_blocks, shared_weights)

    fwd = jax.jit(lambda inp: cascading_block_pallas(inp, params, alpha))
    out = jax.block_until_ready(fwd(x))

    ref = cascading_ref(x, params, groups, alpha)
    assert out.shape == (N, C, H, W)
    max_err = float(jnp.max(jnp.abs(out - ref)))
    # bf16 MXU operands (f32 accumulation) vs. the f32 HIGHEST-precision reference.
    assert jnp.allclose(out, ref, atol=5e-2, rtol=5e-2), max_err
    print("KERNEL_OK")
</pallas_src>

<mosaic_0001>
module attributes {stable_mosaic.version = 11 : i64} {
  func.func @_stage_kernel(%arg0: i32, %arg1: memref<8x256xf32, #tpu.memory_space<vmem>>, %arg2: memref<8x256xf32, #tpu.memory_space<vmem>>, %arg3: memref<8x72xbf16, #tpu.memory_space<vmem>>, %arg4: memref<8x72xbf16, #tpu.memory_space<vmem>>, %arg5: memref<8x8xbf16, #tpu.memory_space<vmem>>, %arg6: memref<8x8xbf16, #tpu.memory_space<vmem>>, %arg7: memref<8x4xf32, #tpu.memory_space<vmem>>, %arg8: memref<8x256xf32, #tpu.memory_space<vmem>>, %arg9: memref<8x256xf32, #tpu.memory_space<vmem>>) attributes {dimension_semantics = [#tpu.dimension_semantics<parallel>], iteration_bounds = array<i64: 2>, scalar_prefetch = 0 : i64, scratch_operands = 0 : i64, tpu.core_type = #tpu.core_type<tc>, window_params = [{transform_indices = @transform_0, window_bounds = array<i64: 8, 256>}, {transform_indices = @transform_1, window_bounds = array<i64: 8, 256>}, {pipeline_mode = #tpu.pipeline_mode<synchronous>, transform_indices = @transform_2, window_bounds = array<i64: 8, 72>}, {pipeline_mode = #tpu.pipeline_mode<synchronous>, transform_indices = @transform_3, window_bounds = array<i64: 8, 72>}, {pipeline_mode = #tpu.pipeline_mode<synchronous>, transform_indices = @transform_4, window_bounds = array<i64: 8, 8>}, {pipeline_mode = #tpu.pipeline_mode<synchronous>, transform_indices = @transform_5, window_bounds = array<i64: 8, 8>}, {pipeline_mode = #tpu.pipeline_mode<synchronous>, transform_indices = @transform_6, window_bounds = array<i64: 8, 4>}, {transform_indices = @transform_7, window_bounds = array<i64: 8, 256>}, {transform_indices = @transform_8, window_bounds = array<i64: 8, 256>}]} {
    %c0 = arith.constant 0 : index
    %c0_0 = arith.constant 0 : index
    %0 = vector.load %arg1[%c0, %c0_0] : memref<8x256xf32, #tpu.memory_space<vmem>>, vector<8x256xf32>
    %c0_1 = arith.constant 0 : index
    %c0_2 = arith.constant 0 : index
    %1 = vector.load %arg2[%c0_1, %c0_2] : memref<8x256xf32, #tpu.memory_space<vmem>>, vector<8x256xf32>
    %c0_3 = arith.constant 0 : index
    %c0_4 = arith.constant 0 : index
    %2 = vector.load %arg7[%c0_3, %c0_4] : memref<8x4xf32, #tpu.memory_space<vmem>>, vector<8x4xf32>
    %3 = tpu.iota {dimensions = array<i32: 1>} : vector<8x256xi32>
    %c16_i32 = arith.constant 16 : i32
    %c0_i32 = arith.constant 0 : i32
    %4 = arith.cmpi eq, %c16_i32, %c0_i32 : i32
    %c1_i32 = arith.constant 1 : i32
    %5 = arith.select %4, %c1_i32, %c16_i32 : i32
    %6 = vector.broadcast %5 : i32 to vector<8x256xi32>
    %7 = arith.remsi %3, %6 : vector<8x256xi32>
    %c0_i32_5 = arith.constant 0 : i32
    %8 = vector.broadcast %c0_i32_5 : i32 to vector<8x256xi32>
    %9 = arith.cmpi ne, %7, %8 : vector<8x256xi32>
    %c0_i32_6 = arith.constant 0 : i32
    %10 = vector.broadcast %c0_i32_6 : i32 to vector<8x256xi32>
    %11 = arith.cmpi slt, %7, %10 : vector<8x256xi32>
    %c0_i32_7 = arith.constant 0 : i32
    %12 = arith.cmpi slt, %5, %c0_i32_7 : i32
    %13 = vector.broadcast %12 : i1 to vector<8x256xi1>
    %14 = vector.broadcast %13 : vector<8x256xi1> to vector<8x256xi1>
    %15 = arith.xori %11, %14 : vector<8x256xi1>
    %16 = arith.andi %15, %9 : vector<8x256xi1>
    %17 = vector.broadcast %5 : i32 to vector<8x256xi32>
    %18 = arith.addi %7, %17 : vector<8x256xi32>
    %19 = arith.select %16, %18, %7 : vector<8x256xi1>, vector<8x256xi32>
    %c0_i32_8 = arith.constant 0 : i32
    %20 = vector.broadcast %c0_i32_8 : i32 to vector<8x256xi32>
    %21 = arith.cmpi eq, %19, %20 : vector<8x256xi32>
    %c15_i32 = arith.constant 15 : i32
    %22 = vector.broadcast %c15_i32 : i32 to vector<8x256xi32>
    %23 = arith.cmpi eq, %19, %22 : vector<8x256xi32>
    %24 = vector.extract_strided_slice %0 {offsets = [0, 16], sizes = [8, 16], strides = [1, 1]} : vector<8x256xf32> to vector<8x16xf32>
    %25 = vector.extract_strided_slice %0 {offsets = [0, 0], sizes = [8, 240], strides = [1, 1]} : vector<8x256xf32> to vector<8x240xf32>
    %26 = tpu.concatenate %24, %25 in 1 : vector<8x16xf32>, vector<8x240xf32> -> vector<8x256xf32>
    %27 = vector.extract_strided_slice %0 {offsets = [0, 16], sizes = [8, 240], strides = [1, 1]} : vector<8x256xf32> to vector<8x240xf32>
    %28 = vector.extract_strided_slice %0 {offsets = [0, 224], sizes = [8, 16], strides = [1, 1]} : vector<8x256xf32> to vector<8x16xf32>
    %29 = tpu.concatenate %27, %28 in 1 : vector<8x240xf32>, vector<8x16xf32> -> vector<8x256xf32>
    %30 = vector.extract_strided_slice %26 {offsets = [0, 1], sizes = [8, 255], strides = [1, 1]} : vector<8x256xf32> to vector<8x255xf32>
    %31 = vector.extract_strided_slice %26 {offsets = [0, 0], sizes = [8, 1], strides = [1, 1]} : vector<8x256xf32> to vector<8x1xf32>
    %32 = tpu.concatenate %30, %31 in 1 : vector<8x255xf32>, vector<8x1xf32> -> vector<8x256xf32>
    %33 = vector.extract_strided_slice %26 {offsets = [0, 255], sizes = [8, 1], strides = [1, 1]} : vector<8x256xf32> to vector<8x1xf32>
    %34 = vector.extract_strided_slice %26 {offsets = [0, 0], sizes = [8, 255], strides = [1, 1]} : vector<8x256xf32> to vector<8x255xf32>
    %35 = tpu.concatenate %33, %34 in 1 : vector<8x1xf32>, vector<8x255xf32> -> vector<8x256xf32>
    %36 = arith.select %21, %32, %35 : vector<8x256xi1>, vector<8x256xf32>
    %37 = arith.select %23, %35, %32 : vector<8x256xi1>, vector<8x256xf32>
    %38 = vector.extract_strided_slice %0 {offsets = [0, 1], sizes = [8, 255], strides = [1, 1]} : vector<8x256xf32> to vector<8x255xf32>
    %39 = vector.extract_strided_slice %0 {offsets = [0, 0], sizes = [8, 1], strides = [1, 1]} : vector<8x256xf32> to vector<8x1xf32>
    %40 = tpu.concatenate %38, %39 in 1 : vector<8x255xf32>, vector<8x1xf32> -> vector<8x256xf32>
    %41 = vector.extract_strided_slice %0 {offsets = [0, 255], sizes = [8, 1], strides = [1, 1]} : vector<8x256xf32> to vector<8x1xf32>
    %42 = vector.extract_strided_slice %0 {offsets = [0, 0], sizes = [8, 255], strides = [1, 1]} : vector<8x256xf32> to vector<8x255xf32>
    %43 = tpu.concatenate %41, %42 in 1 : vector<8x1xf32>, vector<8x255xf32> -> vector<8x256xf32>
    %44 = arith.select %21, %40, %43 : vector<8x256xi1>, vector<8x256xf32>
    %45 = arith.select %23, %43, %40 : vector<8x256xi1>, vector<8x256xf32>
    %46 = vector.extract_strided_slice %29 {offsets = [0, 1], sizes = [8, 255], strides = [1, 1]} : vector<8x256xf32> to vector<8x255xf32>
    %47 = vector.extract_strided_slice %29 {offsets = [0, 0], sizes = [8, 1], strides = [1, 1]} : vector<8x256xf32> to vector<8x1xf32>
    %48 = tpu.concatenate %46, %47 in 1 : vector<8x255xf32>, vector<8x1xf32> -> vector<8x256xf32>
    %49 = vector.extract_strided_slice %29 {offsets = [0, 255], sizes = [8, 1], strides = [1, 1]} : vector<8x256xf32> to vector<8x1xf32>
    %50 = vector.extract_strided_slice %29 {offsets = [0, 0], sizes = [8, 255], strides = [1, 1]} : vector<8x256xf32> to vector<8x255xf32>
    %51 = tpu.concatenate %49, %50 in 1 : vector<8x1xf32>, vector<8x255xf32> -> vector<8x256xf32>
    %52 = arith.select %21, %48, %51 : vector<8x256xi1>, vector<8x256xf32>
    %53 = arith.select %23, %51, %48 : vector<8x256xi1>, vector<8x256xf32>
    %54 = tpu.concatenate %36, %26, %37, %44, %0, %45, %52, %29, %53 in 0 : vector<8x256xf32>, vector<8x256xf32>, vector<8x256xf32>, vector<8x256xf32>, vector<8x256xf32>, vector<8x256xf32>, vector<8x256xf32>, vector<8x256xf32>, vector<8x256xf32> -> vector<72x256xf32>
    %55 = arith.truncf %54 : vector<72x256xf32> to vector<72x256xbf16>
    %c0_9 = arith.constant 0 : index
    %c0_10 = arith.constant 0 : index
    %56 = vector.load %arg3[%c0_9, %c0_10] : memref<8x72xbf16, #tpu.memory_space<vmem>>, vector<8x72xbf16>
    %cst = arith.constant dense<0.000000e+00> : vector<8x256xf32>
    %57 = tpu.matmul %56, %55, %cst {dimension_numbers = #tpu.dot_dimension_numbers<[1], [0], [0], [1], [0, 0, 1, 1], [], []>} : vector<8x72xbf16>, vector<72x256xbf16>, vector<8x256xf32> -> vector<8x256xf32>
    %58 = vector.extract_strided_slice %2 {offsets = [0, 0], sizes = [8, 1], strides = [1, 1]} : vector<8x4xf32> to vector<8x1xf32>
    %59 = vector.broadcast %58 : vector<8x1xf32> to vector<8x256xf32>
    %60 = arith.addf %57, %59 : vector<8x256xf32>
    %cst_11 = arith.constant 0.000000e+00 : f32
    %61 = vector.broadcast %cst_11 : f32 to vector<8x256xf32>
    %62 = arith.cmpf oge, %60, %61 : vector<8x256xf32>
    %cst_12 = arith.constant 2.000000e-01 : f32
    %63 = vector.broadcast %cst_12 : f32 to vector<8x256xf32>
    %64 = arith.mulf %63, %60 : vector<8x256xf32>
    %65 = arith.select %62, %60, %64 : vector<8x256xi1>, vector<8x256xf32>
    %66 = vector.extract_strided_slice %65 {offsets = [0, 16], sizes = [8, 16], strides = [1, 1]} : vector<8x256xf32> to vector<8x16xf32>
    %67 = vector.extract_strided_slice %65 {offsets = [0, 0], sizes = [8, 240], strides = [1, 1]} : vector<8x256xf32> to vector<8x240xf32>
    %68 = tpu.concatenate %66, %67 in 1 : vector<8x16xf32>, vector<8x240xf32> -> vector<8x256xf32>
    %69 = vector.extract_strided_slice %65 {offsets = [0, 16], sizes = [8, 240], strides = [1, 1]} : vector<8x256xf32> to vector<8x240xf32>
    %70 = vector.extract_strided_slice %65 {offsets = [0, 224], sizes = [8, 16], strides = [1, 1]} : vector<8x256xf32> to vector<8x16xf32>
    %71 = tpu.concatenate %69, %70 in 1 : vector<8x240xf32>, vector<8x16xf32> -> vector<8x256xf32>
    %72 = vector.extract_strided_slice %68 {offsets = [0, 1], sizes = [8, 255], strides = [1, 1]} : vector<8x256xf32> to vector<8x255xf32>
    %73 = vector.extract_strided_slice %68 {offsets = [0, 0], sizes = [8, 1], strides = [1, 1]} : vector<8x256xf32> to vector<8x1xf32>
    %74 = tpu.concatenate %72, %73 in 1 : vector<8x255xf32>, vector<8x1xf32> -> vector<8x256xf32>
    %75 = vector.extract_strided_slice %68 {offsets = [0, 255], sizes = [8, 1], strides = [1, 1]} : vector<8x256xf32> to vector<8x1xf32>
    %76 = vector.extract_strided_slice %68 {offsets = [0, 0], sizes = [8, 255], strides = [1, 1]} : vector<8x256xf32> to vector<8x255xf32>
    %77 = tpu.concatenate %75, %76 in 1 : vector<8x1xf32>, vector<8x255xf32> -> vector<8x256xf32>
    %78 = arith.select %21, %74, %77 : vector<8x256xi1>, vector<8x256xf32>
    %79 = arith.select %23, %77, %74 : vector<8x256xi1>, vector<8x256xf32>
    %80 = vector.extract_strided_slice %65 {offsets = [0, 1], sizes = [8, 255], strides = [1, 1]} : vector<8x256xf32> to vector<8x255xf32>
    %81 = vector.extract_strided_slice %65 {offsets = [0, 0], sizes = [8, 1], strides = [1, 1]} : vector<8x256xf32> to vector<8x1xf32>
    %82 = tpu.concatenate %80, %81 in 1 : vector<8x255xf32>, vector<8x1xf32> -> vector<8x256xf32>
    %83 = vector.extract_strided_slice %65 {offsets = [0, 255], sizes = [8, 1], strides = [1, 1]} : vector<8x256xf32> to vector<8x1xf32>
    %84 = vector.extract_strided_slice %65 {offsets = [0, 0], sizes = [8, 255], strides = [1, 1]} : vector<8x256xf32> to vector<8x255xf32>
    %85 = tpu.concatenate %83, %84 in 1 : vector<8x1xf32>, vector<8x255xf32> -> vector<8x256xf32>
    %86 = arith.select %21, %82, %85 : vector<8x256xi1>, vector<8x256xf32>
    %87 = arith.select %23, %85, %82 : vector<8x256xi1>, vector<8x256xf32>
    %88 = vector.extract_strided_slice %71 {offsets = [0, 1], sizes = [8, 255], strides = [1, 1]} : vector<8x256xf32> to vector<8x255xf32>
    %89 = vector.extract_strided_slice %71 {offsets = [0, 0], sizes = [8, 1], strides = [1, 1]} : vector<8x256xf32> to vector<8x1xf32>
    %90 = tpu.concatenate %88, %89 in 1 : vector<8x255xf32>, vector<8x1xf32> -> vector<8x256xf32>
    %91 = vector.extract_strided_slice %71 {offsets = [0, 255], sizes = [8, 1], strides = [1, 1]} : vector<8x256xf32> to vector<8x1xf32>
    %92 = vector.extract_strided_slice %71 {offsets = [0, 0], sizes = [8, 255], strides = [1, 1]} : vector<8x256xf32> to vector<8x255xf32>
    %93 = tpu.concatenate %91, %92 in 1 : vector<8x1xf32>, vector<8x255xf32> -> vector<8x256xf32>
    %94 = arith.select %21, %90, %93 : vector<8x256xi1>, vector<8x256xf32>
    %95 = arith.select %23, %93, %90 : vector<8x256xi1>, vector<8x256xf32>
    %96 = tpu.concatenate %78, %68, %79, %86, %65, %87, %94, %71, %95 in 0 : vector<8x256xf32>, vector<8x256xf32>, vector<8x256xf32>, vector<8x256xf32>, vector<8x256xf32>, vector<8x256xf32>, vector<8x256xf32>, vector<8x256xf32>, vector<8x256xf32> -> vector<72x256xf32>
    %97 = arith.truncf %96 : vector<72x256xf32> to vector<72x256xbf16>
    %c0_13 = arith.constant 0 : index
    %c0_14 = arith.constant 0 : index
    %98 = vector.load %arg4[%c0_13, %c0_14] : memref<8x72xbf16, #tpu.memory_space<vmem>>, vector<8x72xbf16>
    %cst_15 = arith.constant dense<0.000000e+00> : vector<8x256xf32>
    %99 = tpu.matmul %98, %97, %cst_15 {dimension_numbers = #tpu.dot_dimension_numbers<[1], [0], [0], [1], [0, 0, 1, 1], [], []>} : vector<8x72xbf16>, vector<72x256xbf16>, vector<8x256xf32> -> vector<8x256xf32>
    %100 = vector.extract_strided_slice %2 {offsets = [0, 1], sizes = [8, 1], strides = [1, 1]} : vector<8x4xf32> to vector<8x1xf32>
    %101 = vector.broadcast %100 : vector<8x1xf32> to vector<8x256xf32>
    %102 = arith.addf %99, %101 : vector<8x256xf32>
    %cst_16 = arith.constant 0.000000e+00 : f32
    %103 = vector.broadcast %cst_16 : f32 to vector<8x256xf32>
    %104 = arith.cmpf oge, %102, %103 : vector<8x256xf32>
    %cst_17 = arith.constant 2.000000e-01 : f32
    %105 = vector.broadcast %cst_17 : f32 to vector<8x256xf32>
    %106 = arith.mulf %105, %102 : vector<8x256xf32>
    %107 = arith.select %104, %102, %106 : vector<8x256xi1>, vector<8x256xf32>
    %c0_18 = arith.constant 0 : index
    %c0_19 = arith.constant 0 : index
    %108 = vector.load %arg5[%c0_18, %c0_19] : memref<8x8xbf16, #tpu.memory_space<vmem>>, vector<8x8xbf16>
    %109 = arith.truncf %107 : vector<8x256xf32> to vector<8x256xbf16>
    %cst_20 = arith.constant dense<0.000000e+00> : vector<8x256xf32>
    %110 = tpu.matmul %108, %109, %cst_20 {dimension_numbers = #tpu.dot_dimension_numbers<[1], [0], [0], [1], [0, 0, 1, 1], [], []>} : vector<8x8xbf16>, vector<8x256xbf16>, vector<8x256xf32> -> vector<8x256xf32>
    %111 = vector.extract_strided_slice %2 {offsets = [0, 2], sizes = [8, 1], strides = [1, 1]} : vector<8x4xf32> to vector<8x1xf32>
    %112 = vector.broadcast %111 : vector<8x1xf32> to vector<8x256xf32>
    %113 = arith.addf %110, %112 : vector<8x256xf32>
    %114 = arith.addf %0, %113 : vector<8x256xf32>
    %cst_21 = arith.constant 0.000000e+00 : f32
    %115 = vector.broadcast %cst_21 : f32 to vector<8x256xf32>
    %116 = arith.cmpf oge, %114, %115 : vector<8x256xf32>
    %cst_22 = arith.constant 2.000000e-01 : f32
    %117 = vector.broadcast %cst_22 : f32 to vector<8x256xf32>
    %118 = arith.mulf %117, %114 : vector<8x256xf32>
    %119 = arith.select %116, %114, %118 : vector<8x256xi1>, vector<8x256xf32>
    %c0_23 = arith.constant 0 : index
    %c0_24 = arith.constant 0 : index
    %120 = vector.load %arg6[%c0_23, %c0_24] : memref<8x8xbf16, #tpu.memory_space<vmem>>, vector<8x8xbf16>
    %121 = arith.truncf %119 : vector<8x256xf32> to vector<8x256xbf16>
    %cst_25 = arith.constant dense<0.000000e+00> : vector<8x256xf32>
    %122 = tpu.matmul %120, %121, %cst_25 {dimension_numbers = #tpu.dot_dimension_numbers<[1], [0], [0], [1], [0, 0, 1, 1], [], []>} : vector<8x8xbf16>, vector<8x256xbf16>, vector<8x256xf32> -> vector<8x256xf32>
    %123 = vector.extract_strided_slice %2 {offsets = [0, 3], sizes = [8, 1], strides = [1, 1]} : vector<8x4xf32> to vector<8x1xf32>
    %124 = vector.broadcast %123 : vector<8x1xf32> to vector<8x256xf32>
    %125 = arith.addf %122, %124 : vector<8x256xf32>
    %126 = arith.addf %125, %1 : vector<8x256xf32>
    %c0_26 = arith.constant 0 : index
    %c0_27 = arith.constant 0 : index
    %127 = vector.load %arg8[%c0_26, %c0_27] : memref<8x256xf32, #tpu.memory_space<vmem>>, vector<8x256xf32>
    tpu.vector_store %arg8[%c0_26, %c0_27], %126 {strides = array<i32>} : memref<8x256xf32, #tpu.memory_space<vmem>>, vector<8x256xf32>,
    %128 = arith.addf %1, %119 : vector<8x256xf32>
    %c0_28 = arith.constant 0 : index
    %c0_29 = arith.constant 0 : index
    %129 = vector.load %arg9[%c0_28, %c0_29] : memref<8x256xf32, #tpu.memory_space<vmem>>, vector<8x256xf32>
    tpu.vector_store %arg9[%c0_28, %c0_29], %128 {strides = array<i32>} : memref<8x256xf32, #tpu.memory_space<vmem>>, vector<8x256xf32>,
    return
  }
  func.func @transform_0(%arg0: i32) -> (i32, i32) {
    %c0_i32 = arith.constant 0 : i32
    %c0_i32_0 = arith.constant 0 : i32
    return %arg0, %c0_i32 : i32, i32
  }
  func.func @transform_1(%arg0: i32) -> (i32, i32) {
    %c0_i32 = arith.constant 0 : i32
    %c0_i32_0 = arith.constant 0 : i32
    return %arg0, %c0_i32 : i32, i32
  }
  func.func @transform_2(%arg0: i32) -> (i32, i32) {
    %c0_i32 = arith.constant 0 : i32
    %c0_i32_0 = arith.constant 0 : i32
    %c0_i32_1 = arith.constant 0 : i32
    return %c0_i32, %c0_i32_0 : i32, i32
  }
  func.func @transform_3(%arg0: i32) -> (i32, i32) {
    %c0_i32 = arith.constant 0 : i32
    %c0_i32_0 = arith.constant 0 : i32
    %c0_i32_1 = arith.constant 0 : i32
    return %c0_i32, %c0_i32_0 : i32, i32
  }
  func.func @transform_4(%arg0: i32) -> (i32, i32) {
    %c0_i32 = arith.constant 0 : i32
    %c0_i32_0 = arith.constant 0 : i32
    %c0_i32_1 = arith.constant 0 : i32
    return %c0_i32, %c0_i32_0 : i32, i32
  }
  func.func @transform_5(%arg0: i32) -> (i32, i32) {
    %c0_i32 = arith.constant 0 : i32
    %c0_i32_0 = arith.constant 0 : i32
    %c0_i32_1 = arith.constant 0 : i32
    return %c0_i32, %c0_i32_0 : i32, i32
  }
  func.func @transform_6(%arg0: i32) -> (i32, i32) {
    %c0_i32 = arith.constant 0 : i32
    %c0_i32_0 = arith.constant 0 : i32
    %c0_i32_1 = arith.constant 0 : i32
    return %c0_i32, %c0_i32_0 : i32, i32
  }
  func.func @transform_7(%arg0: i32) -> (i32, i32) {
    %c0_i32 = arith.constant 0 : i32
    %c0_i32_0 = arith.constant 0 : i32
    return %arg0, %c0_i32 : i32, i32
  }
  func.func @transform_8(%arg0: i32) -> (i32, i32) {
    %c0_i32 = arith.constant 0 : i32
    %c0_i32_0 = arith.constant 0 : i32
    return %arg0, %c0_i32 : i32, i32
  }
}

module attributes {stable_mosaic.version = 11 : i64} {
  func.func @_stage_kernel(%arg0: i32, %arg1: memref<8x256xf32, #tpu.memory_space<vmem>>, %arg2: memref<8x256xf32, #tpu.memory_space<vmem>>, %arg3: memref<8x72xbf16, #tpu.memory_space<vmem>>, %arg4: memref<8x72xbf16, #tpu.memory_space<vmem>>, %arg5: memref<8x8xbf16, #tpu.memory_space<vmem>>, %arg6: memref<8x8xbf16, #tpu.memory_space<vmem>>, %arg7: memref<8x4xf32, #tpu.memory_space<vmem>>, %arg8: memref<8x256xf32, #tpu.memory_space<vmem>>, %arg9: memref<8x256xf32, #tpu.memory_space<vmem>>) attributes {dimension_semantics = [#tpu.dimension_semantics<parallel>], iteration_bounds = array<i64: 2>, scalar_prefetch = 0 : i64, scratch_operands = 0 : i64, tpu.core_type = #tpu.core_type<tc>, window_params = [{transform_indices = @transform_0, window_bounds = array<i64: 8, 256>}, {transform_indices = @transform_1, window_bounds = array<i64: 8, 256>}, {pipeline_mode = #tpu.pipeline_mode<synchronous>, transform_indices = @transform_2, window_bounds = array<i64: 8, 72>}, {pipeline_mode = #tpu.pipeline_mode<synchronous>, transform_indices = @transform_3, window_bounds = array<i64: 8, 72>}, {pipeline_mode = #tpu.pipeline_mode<synchronous>, transform_indices = @transform_4, window_bounds = array<i64: 8, 8>}, {pipeline_mode = #tpu.pipeline_mode<synchronous>, transform_indices = @transform_5, window_bounds = array<i64: 8, 8>}, {pipeline_mode = #tpu.pipeline_mode<synchronous>, transform_indices = @transform_6, window_bounds = array<i64: 8, 4>}, {transform_indices = @transform_7, window_bounds = array<i64: 8, 256>}, {transform_indices = @transform_8, window_bounds = array<i64: 8, 256>}]} {
    %c0 = arith.constant 0 : index
    %c0_0 = arith.constant 0 : index
    %0 = vector.load %arg1[%c0, %c0_0] : memref<8x256xf32, #tpu.memory_space<vmem>>, vector<8x256xf32>
    %c0_1 = arith.constant 0 : index
    %c0_2 = arith.constant 0 : index
    %1 = vector.load %arg2[%c0_1, %c0_2] : memref<8x256xf32, #tpu.memory_space<vmem>>, vector<8x256xf32>
    %c0_3 = arith.constant 0 : index
    %c0_4 = arith.constant 0 : index
    %2 = vector.load %arg7[%c0_3, %c0_4] : memref<8x4xf32, #tpu.memory_space<vmem>>, vector<8x4xf32>
    %3 = tpu.iota {dimensions = array<i32: 1>} : vector<8x256xi32>
    %c16_i32 = arith.constant 16 : i32
    %c0_i32 = arith.constant 0 : i32
    %4 = arith.cmpi eq, %c16_i32, %c0_i32 : i32
    %c1_i32 = arith.constant 1 : i32
    %5 = arith.select %4, %c1_i32, %c16_i32 : i32
    %6 = vector.broadcast %5 : i32 to vector<8x256xi32>
    %7 = arith.remsi %3, %6 : vector<8x256xi32>
    %c0_i32_5 = arith.constant 0 : i32
    %8 = vector.broadcast %c0_i32_5 : i32 to vector<8x256xi32>
    %9 = arith.cmpi ne, %7, %8 : vector<8x256xi32>
    %c0_i32_6 = arith.constant 0 : i32
    %10 = vector.broadcast %c0_i32_6 : i32 to vector<8x256xi32>
    %11 = arith.cmpi slt, %7, %10 : vector<8x256xi32>
    %c0_i32_7 = arith.constant 0 : i32
    %12 = arith.cmpi slt, %5, %c0_i32_7 : i32
    %13 = vector.broadcast %12 : i1 to vector<8x256xi1>
    %14 = vector.broadcast %13 : vector<8x256xi1> to vector<8x256xi1>
    %15 = arith.xori %11, %14 : vector<8x256xi1>
    %16 = arith.andi %15, %9 : vector<8x256xi1>
    %17 = vector.broadcast %5 : i32 to vector<8x256xi32>
    %18 = arith.addi %7, %17 : vector<8x256xi32>
    %19 = arith.select %16, %18, %7 : vector<8x256xi1>, vector<8x256xi32>
    %c0_i32_8 = arith.constant 0 : i32
    %20 = vector.broadcast %c0_i32_8 : i32 to vector<8x256xi32>
    %21 = arith.cmpi eq, %19, %20 : vector<8x256xi32>
    %c15_i32 = arith.constant 15 : i32
    %22 = vector.broadcast %c15_i32 : i32 to vector<8x256xi32>
    %23 = arith.cmpi eq, %19, %22 : vector<8x256xi32>
    %24 = vector.extract_strided_slice %0 {offsets = [0, 16], sizes = [8, 16], strides = [1, 1]} : vector<8x256xf32> to vector<8x16xf32>
    %25 = vector.extract_strided_slice %0 {offsets = [0, 0], sizes = [8, 240], strides = [1, 1]} : vector<8x256xf32> to vector<8x240xf32>
    %26 = tpu.concatenate %24, %25 in 1 : vector<8x16xf32>, vector<8x240xf32> -> vector<8x256xf32>
    %27 = vector.extract_strided_slice %0 {offsets = [0, 16], sizes = [8, 240], strides = [1, 1]} : vector<8x256xf32> to vector<8x240xf32>
    %28 = vector.extract_strided_slice %0 {offsets = [0, 224], sizes = [8, 16], strides = [1, 1]} : vector<8x256xf32> to vector<8x16xf32>
    %29 = tpu.concatenate %27, %28 in 1 : vector<8x240xf32>, vector<8x16xf32> -> vector<8x256xf32>
    %30 = vector.extract_strided_slice %26 {offsets = [0, 1], sizes = [8, 255], strides = [1, 1]} : vector<8x256xf32> to vector<8x255xf32>
    %31 = vector.extract_strided_slice %26 {offsets = [0, 0], sizes = [8, 1], strides = [1, 1]} : vector<8x256xf32> to vector<8x1xf32>
    %32 = tpu.concatenate %30, %31 in 1 : vector<8x255xf32>, vector<8x1xf32> -> vector<8x256xf32>
    %33 = vector.extract_strided_slice %26 {offsets = [0, 255], sizes = [8, 1], strides = [1, 1]} : vector<8x256xf32> to vector<8x1xf32>
    %34 = vector.extract_strided_slice %26 {offsets = [0, 0], sizes = [8, 255], strides = [1, 1]} : vector<8x256xf32> to vector<8x255xf32>
    %35 = tpu.concatenate %33, %34 in 1 : vector<8x1xf32>, vector<8x255xf32> -> vector<8x256xf32>
    %36 = arith.select %21, %32, %35 : vector<8x256xi1>, vector<8x256xf32>
    %37 = arith.select %23, %35, %32 : vector<8x256xi1>, vector<8x256xf32>
    %38 = vector.extract_strided_slice %0 {offsets = [0, 1], sizes = [8, 255], strides = [1, 1]} : vector<8x256xf32> to vector<8x255xf32>
    %39 = vector.extract_strided_slice %0 {offsets = [0, 0], sizes = [8, 1], strides = [1, 1]} : vector<8x256xf32> to vector<8x1xf32>
    %40 = tpu.concatenate %38, %39 in 1 : vector<8x255xf32>, vector<8x1xf32> -> vector<8x256xf32>
    %41 = vector.extract_strided_slice %0 {offsets = [0, 255], sizes = [8, 1], strides = [1, 1]} : vector<8x256xf32> to vector<8x1xf32>
    %42 = vector.extract_strided_slice %0 {offsets = [0, 0], sizes = [8, 255], strides = [1, 1]} : vector<8x256xf32> to vector<8x255xf32>
    %43 = tpu.concatenate %41, %42 in 1 : vector<8x1xf32>, vector<8x255xf32> -> vector<8x256xf32>
    %44 = arith.select %21, %40, %43 : vector<8x256xi1>, vector<8x256xf32>
    %45 = arith.select %23, %43, %40 : vector<8x256xi1>, vector<8x256xf32>
    %46 = vector.extract_strided_slice %29 {offsets = [0, 1], sizes = [8, 255], strides = [1, 1]} : vector<8x256xf32> to vector<8x255xf32>
    %47 = vector.extract_strided_slice %29 {offsets = [0, 0], sizes = [8, 1], strides = [1, 1]} : vector<8x256xf32> to vector<8x1xf32>
    %48 = tpu.concatenate %46, %47 in 1 : vector<8x255xf32>, vector<8x1xf32> -> vector<8x256xf32>
    %49 = vector.extract_strided_slice %29 {offsets = [0, 255], sizes = [8, 1], strides = [1, 1]} : vector<8x256xf32> to vector<8x1xf32>
    %50 = vector.extract_strided_slice %29 {offsets = [0, 0], sizes = [8, 255], strides = [1, 1]} : vector<8x256xf32> to vector<8x255xf32>
    %51 = tpu.concatenate %49, %50 in 1 : vector<8x1xf32>, vector<8x255xf32> -> vector<8x256xf32>
    %52 = arith.select %21, %48, %51 : vector<8x256xi1>, vector<8x256xf32>
    %53 = arith.select %23, %51, %48 : vector<8x256xi1>, vector<8x256xf32>
    %54 = tpu.concatenate %36, %26, %37, %44, %0, %45, %52, %29, %53 in 0 : vector<8x256xf32>, vector<8x256xf32>, vector<8x256xf32>, vector<8x256xf32>, vector<8x256xf32>, vector<8x256xf32>, vector<8x256xf32>, vector<8x256xf32>, vector<8x256xf32> -> vector<72x256xf32>
    %55 = arith.truncf %54 : vector<72x256xf32> to vector<72x256xbf16>
    %c0_9 = arith.constant 0 : index
    %c0_10 = arith.constant 0 : index
    %56 = vector.load %arg3[%c0_9, %c0_10] : memref<8x72xbf16, #tpu.memory_space<vmem>>, vector<8x72xbf16>
    %cst = arith.constant dense<0.000000e+00> : vector<8x256xf32>
    %57 = tpu.matmul %56, %55, %cst {dimension_numbers = #tpu.dot_dimension_numbers<[1], [0], [0], [1], [0, 0, 1, 1], [], []>} : vector<8x72xbf16>, vector<72x256xbf16>, vector<8x256xf32> -> vector<8x256xf32>
    %58 = vector.extract_strided_slice %2 {offsets = [0, 0], sizes = [8, 1], strides = [1, 1]} : vector<8x4xf32> to vector<8x1xf32>
    %59 = vector.broadcast %58 : vector<8x1xf32> to vector<8x256xf32>
    %60 = arith.addf %57, %59 : vector<8x256xf32>
    %cst_11 = arith.constant 0.000000e+00 : f32
    %61 = vector.broadcast %cst_11 : f32 to vector<8x256xf32>
    %62 = arith.cmpf oge, %60, %61 : vector<8x256xf32>
    %cst_12 = arith.constant 2.000000e-01 : f32
    %63 = vector.broadcast %cst_12 : f32 to vector<8x256xf32>
    %64 = arith.mulf %63, %60 : vector<8x256xf32>
    %65 = arith.select %62, %60, %64 : vector<8x256xi1>, vector<8x256xf32>
    %66 = vector.extract_strided_slice %65 {offsets = [0, 16], sizes = [8, 16], strides = [1, 1]} : vector<8x256xf32> to vector<8x16xf32>
    %67 = vector.extract_strided_slice %65 {offsets = [0, 0], sizes = [8, 240], strides = [1, 1]} : vector<8x256xf32> to vector<8x240xf32>
    %68 = tpu.concatenate %66, %67 in 1 : vector<8x16xf32>, vector<8x240xf32> -> vector<8x256xf32>
    %69 = vector.extract_strided_slice %65 {offsets = [0, 16], sizes = [8, 240], strides = [1, 1]} : vector<8x256xf32> to vector<8x240xf32>
    %70 = vector.extract_strided_slice %65 {offsets = [0, 224], sizes = [8, 16], strides = [1, 1]} : vector<8x256xf32> to vector<8x16xf32>
    %71 = tpu.concatenate %69, %70 in 1 : vector<8x240xf32>, vector<8x16xf32> -> vector<8x256xf32>
    %72 = vector.extract_strided_slice %68 {offsets = [0, 1], sizes = [8, 255], strides = [1, 1]} : vector<8x256xf32> to vector<8x255xf32>
    %73 = vector.extract_strided_slice %68 {offsets = [0, 0], sizes = [8, 1], strides = [1, 1]} : vector<8x256xf32> to vector<8x1xf32>
    %74 = tpu.concatenate %72, %73 in 1 : vector<8x255xf32>, vector<8x1xf32> -> vector<8x256xf32>
    %75 = vector.extract_strided_slice %68 {offsets = [0, 255], sizes = [8, 1], strides = [1, 1]} : vector<8x256xf32> to vector<8x1xf32>
    %76 = vector.extract_strided_slice %68 {offsets = [0, 0], sizes = [8, 255], strides = [1, 1]} : vector<8x256xf32> to vector<8x255xf32>
    %77 = tpu.concatenate %75, %76 in 1 : vector<8x1xf32>, vector<8x255xf32> -> vector<8x256xf32>
    %78 = arith.select %21, %74, %77 : vector<8x256xi1>, vector<8x256xf32>
    %79 = arith.select %23, %77, %74 : vector<8x256xi1>, vector<8x256xf32>
    %80 = vector.extract_strided_slice %65 {offsets = [0, 1], sizes = [8, 255], strides = [1, 1]} : vector<8x256xf32> to vector<8x255xf32>
    %81 = vector.extract_strided_slice %65 {offsets = [0, 0], sizes = [8, 1], strides = [1, 1]} : vector<8x256xf32> to vector<8x1xf32>
    %82 = tpu.concatenate %80, %81 in 1 : vector<8x255xf32>, vector<8x1xf32> -> vector<8x256xf32>
    %83 = vector.extract_strided_slice %65 {offsets = [0, 255], sizes = [8, 1], strides = [1, 1]} : vector<8x256xf32> to vector<8x1xf32>
    %84 = vector.extract_strided_slice %65 {offsets = [0, 0], sizes = [8, 255], strides = [1, 1]} : vector<8x256xf32> to vector<8x255xf32>
    %85 = tpu.concatenate %83, %84 in 1 : vector<8x1xf32>, vector<8x255xf32> -> vector<8x256xf32>
    %86 = arith.select %21, %82, %85 : vector<8x256xi1>, vector<8x256xf32>
    %87 = arith.select %23, %85, %82 : vector<8x256xi1>, vector<8x256xf32>
    %88 = vector.extract_strided_slice %71 {offsets = [0, 1], sizes = [8, 255], strides = [1, 1]} : vector<8x256xf32> to vector<8x255xf32>
    %89 = vector.extract_strided_slice %71 {offsets = [0, 0], sizes = [8, 1], strides = [1, 1]} : vector<8x256xf32> to vector<8x1xf32>
    %90 = tpu.concatenate %88, %89 in 1 : vector<8x255xf32>, vector<8x1xf32> -> vector<8x256xf32>
    %91 = vector.extract_strided_slice %71 {offsets = [0, 255], sizes = [8, 1], strides = [1, 1]} : vector<8x256xf32> to vector<8x1xf32>
    %92 = vector.extract_strided_slice %71 {offsets = [0, 0], sizes = [8, 255], strides = [1, 1]} : vector<8x256xf32> to vector<8x255xf32>
    %93 = tpu.concatenate %91, %92 in 1 : vector<8x1xf32>, vector<8x255xf32> -> vector<8x256xf32>
    %94 = arith.select %21, %90, %93 : vector<8x256xi1>, vector<8x256xf32>
    %95 = arith.select %23, %93, %90 : vector<8x256xi1>, vector<8x256xf32>
    %96 = tpu.concatenate %78, %68, %79, %86, %65, %87, %94, %71, %95 in 0 : vector<8x256xf32>, vector<8x256xf32>, vector<8x256xf32>, vector<8x256xf32>, vector<8x256xf32>, vector<8x256xf32>, vector<8x256xf32>, vector<8x256xf32>, vector<8x256xf32> -> vector<72x256xf32>
    %97 = arith.truncf %96 : vector<72x256xf32> to vector<72x256xbf16>
    %c0_13 = arith.constant 0 : index
    %c0_14 = arith.constant 0 : index
    %98 = vector.load %arg4[%c0_13, %c0_14] : memref<8x72xbf16, #tpu.memory_space<vmem>>, vector<8x72xbf16>
    %cst_15 = arith.constant dense<0.000000e+00> : vector<8x256xf32>
    %99 = tpu.matmul %98, %97, %cst_15 {dimension_numbers = #tpu.dot_dimension_numbers<[1], [0], [0], [1], [0, 0, 1, 1], [], []>} : vector<8x72xbf16>, vector<72x256xbf16>, vector<8x256xf32> -> vector<8x256xf32>
    %100 = vector.extract_strided_slice %2 {offsets = [0, 1], sizes = [8, 1], strides = [1, 1]} : vector<8x4xf32> to vector<8x1xf32>
    %101 = vector.broadcast %100 : vector<8x1xf32> to vector<8x256xf32>
    %102 = arith.addf %99, %101 : vector<8x256xf32>
    %cst_16 = arith.constant 0.000000e+00 : f32
    %103 = vector.broadcast %cst_16 : f32 to vector<8x256xf32>
    %104 = arith.cmpf oge, %102, %103 : vector<8x256xf32>
    %cst_17 = arith.constant 2.000000e-01 : f32
    %105 = vector.broadcast %cst_17 : f32 to vector<8x256xf32>
    %106 = arith.mulf %105, %102 : vector<8x256xf32>
    %107 = arith.select %104, %102, %106 : vector<8x256xi1>, vector<8x256xf32>
    %c0_18 = arith.constant 0 : index
    %c0_19 = arith.constant 0 : index
    %108 = vector.load %arg5[%c0_18, %c0_19] : memref<8x8xbf16, #tpu.memory_space<vmem>>, vector<8x8xbf16>
    %109 = arith.truncf %107 : vector<8x256xf32> to vector<8x256xbf16>
    %cst_20 = arith.constant dense<0.000000e+00> : vector<8x256xf32>
    %110 = tpu.matmul %108, %109, %cst_20 {dimension_numbers = #tpu.dot_dimension_numbers<[1], [0], [0], [1], [0, 0, 1, 1], [], []>} : vector<8x8xbf16>, vector<8x256xbf16>, vector<8x256xf32> -> vector<8x256xf32>
    %111 = vector.extract_strided_slice %2 {offsets = [0, 2], sizes = [8, 1], strides = [1, 1]} : vector<8x4xf32> to vector<8x1xf32>
    %112 = vector.broadcast %111 : vector<8x1xf32> to vector<8x256xf32>
    %113 = arith.addf %110, %112 : vector<8x256xf32>
    %114 = arith.addf %0, %113 : vector<8x256xf32>
    %cst_21 = arith.constant 0.000000e+00 : f32
    %115 = vector.broadcast %cst_21 : f32 to vector<8x256xf32>
    %116 = arith.cmpf oge, %114, %115 : vector<8x256xf32>
    %cst_22 = arith.constant 2.000000e-01 : f32
    %117 = vector.broadcast %cst_22 : f32 to vector<8x256xf32>
    %118 = arith.mulf %117, %114 : vector<8x256xf32>
    %119 = arith.select %116, %114, %118 : vector<8x256xi1>, vector<8x256xf32>
    %c0_23 = arith.constant 0 : index
    %c0_24 = arith.constant 0 : index
    %120 = vector.load %arg6[%c0_23, %c0_24] : memref<8x8xbf16, #tpu.memory_space<vmem>>, vector<8x8xbf16>
    %121 = arith.truncf %119 : vector<8x256xf32> to vector<8x256xbf16>
    %cst_25 = arith.constant dense<0.000000e+00> : vector<8x256xf32>
    %122 = tpu.matmul %120, %121, %cst_25 {dimension_numbers = #tpu.dot_dimension_numbers<[1], [0], [0], [1], [0, 0, 1, 1], [], []>} : vector<8x8xbf16>, vector<8x256xbf16>, vector<8x256xf32> -> vector<8x256xf32>
    %123 = vector.extract_strided_slice %2 {offsets = [0, 3], sizes = [8, 1], strides = [1, 1]} : vector<8x4xf32> to vector<8x1xf32>
    %124 = vector.broadcast %123 : vector<8x1xf32> to vector<8x256xf32>
    %125 = arith.addf %122, %124 : vector<8x256xf32>
    %126 = arith.addf %125, %1 : vector<8x256xf32>
    %c0_26 = arith.constant 0 : index
    %c0_27 = arith.constant 0 : index
    %127 = vector.load %arg8[%c0_26, %c0_27] : memref<8x256xf32, #tpu.memory_space<vmem>>, vector<8x256xf32>
    tpu.vector_store %arg8[%c0_26, %c0_27], %126 {strides = array<i32>} : memref<8x256xf32, #tpu.memory_space<vmem>>, vector<8x256xf32>,
    %128 = arith.addf %1, %119 : vector<8x256xf32>
    %c0_28 = arith.constant 0 : index
    %c0_29 = arith.constant 0 : index
    %129 = vector.load %arg9[%c0_28, %c0_29] : memref<8x256xf32, #tpu.memory_space<vmem>>, vector<8x256xf32>
    tpu.vector_store %arg9[%c0_28, %c0_29], %128 {strides = array<i32>} : memref<8x256xf32, #tpu.memory_space<vmem>>, vector<8x256xf32>,
    return
  }
  func.func @transform_0(%arg0: i32) -> (i32, i32) {
    %c0_i32 = arith.constant 0 : i32
    %c0_i32_0 = arith.constant 0 : i32
    return %arg0, %c0_i32 : i32, i32
  }
  func.func @transform_1(%arg0: i32) -> (i32, i32) {
    %c0_i32 = arith.constant 0 : i32
    %c0_i32_0 = arith.constant 0 : i32
    return %arg0, %c0_i32 : i32, i32
  }
  func.func @transform_2(%arg0: i32) -> (i32, i32) {
    %c0_i32 = arith.constant 0 : i32
    %c0_i32_0 = arith.constant 0 : i32
    %c0_i32_1 = arith.constant 0 : i32
    return %c0_i32, %c0_i32_0 : i32, i32
  }
  func.func @transform_3(%arg0: i32) -> (i32, i32) {
    %c0_i32 = arith.constant 0 : i32
    %c0_i32_0 = arith.constant 0 : i32
    %c0_i32_1 = arith.constant 0 : i32
    return %c0_i32, %c0_i32_0 : i32, i32
  }
  func.func @transform_4(%arg0: i32) -> (i32, i32) {
    %c0_i32 = arith.constant 0 : i32
    %c0_i32_0 = arith.constant 0 : i32
    %c0_i32_1 = arith.constant 0 : i32
    return %c0_i32, %c0_i32_0 : i32, i32
  }
  func.func @transform_5(%arg0: i32) -> (i32, i32) {
    %c0_i32 = arith.constant 0 : i32
    %c0_i32_0 = arith.constant 0 : i32
    %c0_i32_1 = arith.constant 0 : i32
    return %c0_i32, %c0_i32_0 : i32, i32
  }
  func.func @transform_6(%arg0: i32) -> (i32, i32) {
    %c0_i32 = arith.constant 0 : i32
    %c0_i32_0 = arith.constant 0 : i32
    %c0_i32_1 = arith.constant 0 : i32
    return %c0_i32, %c0_i32_0 : i32, i32
  }
  func.func @transform_7(%arg0: i32) -> (i32, i32) {
    %c0_i32 = arith.constant 0 : i32
    %c0_i32_0 = arith.constant 0 : i32
    return %arg0, %c0_i32 : i32, i32
  }
  func.func @transform_8(%arg0: i32) -> (i32, i32) {
    %c0_i32 = arith.constant 0 : i32
    %c0_i32_0 = arith.constant 0 : i32
    return %arg0, %c0_i32 : i32, i32
  }
}

</mosaic_0001>

<bundles_post_ra>
// kernel: _lambda_.2
= control target key start
LH: loop header
LB: loop body
LE: loop exit
PB: predicated region body
PF: predicated region fallthrough
CT: control target
= control target key end

     0   :  { %s1111_s27 = smov 0   ;;  %s1333_s0 = inlined_call_operand.vmem [shape: f32[16,256], index: 0, kind: input, shape index: {}, may-alias: {0,1}]   ;;  %s1334_s1 = inlined_call_operand.vmem [shape: f32[16,256], index: 1, kind: input, shape index: {}, may-alias: {0,1}]   ;;  %s1335_s2 = inlined_call_operand.vmem [shape: bf16[8,72], index: 2, kind: input, shape index: {}]   ;;  %s1336_s3 = inlined_call_operand.vmem [shape: bf16[8,72], index: 3, kind: input, shape index: {}]   ;;  %s1337_s4 = inlined_call_operand.vmem [shape: bf16[8,8], index: 4, kind: input, shape index: {}]   ;;  %s1338_s5 = inlined_call_operand.vmem [shape: bf16[8,8], index: 5, kind: input, shape index: {}]   ;;  %s1339_s6 = inlined_call_operand.vmem [shape: f32[8,4], index: 6, kind: input, shape index: {}]   ;;  %s1340_s7 = inlined_call_operand.vmem [shape: f32[16,256], index: 7, kind: output, shape index: {0}]   ;;  %s1341_s8 = inlined_call_operand.vmem [shape: f32[16,256], index: 8, kind: output, shape index: {1}]  }
   0x1 LB: > { %s932_s28 = sadd.s32 4294967295, %s1056_s27   ;;  %p936_p0 = scmp.ge.s32.totalorder %s1056_s27, 1  ;;  %s1056_s27 = sphi %s1111_s27, %s19_s27  }
   0x2   : > { %p275_p1 = scmp.lt.s32.totalorder %s1056_s27, 3 }
   0x4   : > { %p276_p2 = pnand %p936_p0, %p275_p1 }
   0x5   : > { %p319_p3 = scmp.lt.s32.totalorder (!%p276_p2), %s932_s28, 1  ;;  %s1058_s11 = smov (!%p276_p2), 112   ;;  %vm385_vm0 = vcmask (!%p276_p2), 130048   ;;  %vm392_vm1 = vcmask (!%p276_p2), 916480   ;;  %v1062_v17 = vmov (!%p276_p2), 0   ;;  %v1162_v18 = vld [vmem:[%s1339_s6] sm:$0xff] (!%p276_p2)  ;;  %v345_v19 = vlaneseq (!%p276_p2) }
   0x6   : > { %279 = sbr.rel (%p276_p2) target bundleno = 1433 (0x599), region = 48  ;;  %s1059_s12 = smov (!%p276_p2), 16   ;;  %527 = vmatprep.mubr.bf16.mxu0 (!%p276_p2), %v1062_v17  ;;  %1010 = vset.pattern.permute.xlu1 (!%p276_p2), %v1062_v17  ;;  %vm414_vm2 = vcmask (!%p276_p2), 7168   ;;  %vm403_vm3 = vcmask (!%p276_p2), 1039360   ;;  %vm488_vm8 = vcmask (!%p276_p2), 1043456   ;;  %vm484_vm9 = vcmask (!%p276_p2), 588800  }
   0x7   : > { %s1060_s13 = smov (!%p276_p2), 1   ;;  %s1061_s14 = smov (!%p276_p2), 127   ;;  %686 = vmatprep.mubr.bf16.mxu1 (!%p276_p2), %v1062_v17  ;;  %v346_v20 = vand.u32 (!%p276_p2), 127, %v345_v19  ;;  %v640_v27 = vld [vmem:[%s1336_s3] sm:$0xf] (!%p276_p2)  ;;  %v1064_v32 = vmov (!%p276_p2), 2  }
   0x8   : > { %1047 = vset.pattern.permute.xlu0 (!%p276_p2), %v1064_v32  ;;  %vm708_vm14 = vcmask (!%p276_p2), 64512  }
   0x9   : > { %v347_v21 = vadd.s32 (!%p276_p2), 128, %v346_v20  ;;  %v352_v23 = vand.u32 (!%p276_p2), 15, %v346_v20 }
   0xb   : > { %v359_v22 = vand.u32 (!%p276_p2), 15, %v347_v21  ;;  %vm1169_vm5 = vcmp.eq.s32.totalorder (!%p276_p2), %v352_v23, 0  ;;  %vm1185_vm7 = vcmp.eq.s32.totalorder (!%p276_p2), %v352_v23, 15 }
   0xd   : > { %s1351_s28 = smov (!%p319_p3, %s932_s28), 1  ;;  %vm1165_vm4 = vcmp.eq.s32.totalorder %v359_v22, 0  ;;  %vm1173_vm6 = vcmp.eq.s32.totalorder %v359_v22, 15  ;;  %v478_v22 = vld [vmem:[%s1335_s2] sm:$0xf] }
   0xe   : > { %s1119_s29 = sshll.u32 %s1351_s28, 4 }
   0xf   : > { %s323_s10 = scalar_lea.vmem %s1333_s0, %s1119_s29  ;;  %s328_s25 = scalar_lea.vmem %s1334_s1, %s1119_s29 }
  0x10   : > { %v1125_v0 = vld [vmem:[%s323_s10 + $0x8] sm:$0xff]  ;;  %v1127_v1 = vld [vmem:[%s323_s10] sm:$0xff]  ;;  %s338_s30 = scalar_lea.vmem %s1341_s8, %s1119_s29 }
  0x11   : > { %390 = vrot.lane.b32.xlu1 %v1125_v0, %s1058_s11  ;;  %377 = vrot.lane.b32.xlu0 %v1127_v1, %s1058_s11  ;;  %v975_v2 = vpack.i.bf16 %v1125_v0, %v1127_v1  ;;  %v995_v11 = vpack.i.bf16 %v1127_v1, %v1125_v0 }
  0x15   : > { %976 = vrot.lane.b32.xlu0 %v975_v2, %s1059_s12 }
  0x83   : > { %v378_v3 = vpop.permute.xlu0 %377  ;;  %v391_v12 = vpop.permute.xlu1 %390 }
  0x84   : > { %v1148_v14 = vsel %vm392_vm1, %v378_v3, %v391_v12 }
  0x87   : > { %v977_v4 = vpop.permute.xlu0 %976 }
  0x88   : > { %v979_v5 = vunpack.i.h.bf16 %v977_v4  ;;  %v978_v6 = vunpack.i.l.bf16 %v977_v4 }
  0x8a   : > { %v386_v7 = vsel %vm385_vm0, %v978_v6, %v979_v5  ;;  %v389_v8 = vsel %vm385_vm0, %v378_v3, %v978_v6  ;;  %v1143_v13 = vsel %vm392_vm1, %v391_v12, %v979_v5 }
  0x8b   : > { %v990_v9 = vpack.i.bf16 %v389_v8, %v386_v7  ;;  %v980_v10 = vpack.i.bf16 %v386_v7, %v389_v8  ;;  %v1005_v15 = vpack.i.bf16 %v1148_v14, %v1143_v13  ;;  %v1000_v16 = vpack.i.bf16 %v1143_v13, %v1148_v14 }
  0x8d   : > { %991 = vrot.lane.b32.xlu0 %v990_v9, %s1060_s13  ;;  %981 = vrot.lane.b32.xlu1 %v980_v10, %s1061_s14 }
  0x91   : > { %996 = vrot.lane.b32.xlu0 %v995_v11, %s1060_s13  ;;  %986 = vrot.lane.b32.xlu1 %v975_v2, %s1061_s14 }
  0x95   : > { %1006 = vrot.lane.b32.xlu0 %v1005_v15, %s1060_s13  ;;  %1001 = vrot.lane.b32.xlu1 %v1000_v16, %s1061_s14 }
  0x99   : > { %481 = vperm.xlu1 %1010, %v1162_v18  }
  0xff   : > { %v992_v24 = vpop.permute.xlu0 %991  ;;  %v982_v25 = vpop.permute.xlu1 %981 }
 0x100   : > { %v994_v28 = vunpack.i.h.bf16 %v992_v24  ;;  %v993_v29 = vunpack.i.l.bf16 %v992_v24  ;;  %v984_v30 = vunpack.i.h.bf16 %v982_v25  ;;  %v983_v31 = vunpack.i.l.bf16 %v982_v25 }
 0x102   : > { %v408_v33 = vsel %vm403_vm3, %v984_v30, %v983_v31  ;;  %v415_v34 = vsel %vm414_vm2, %v994_v28, %v993_v29  ;;  %v404_v35 = vsel %vm403_vm3, %v983_v31, %v984_v30  ;;  %v418_v36 = vsel %vm414_vm2, %v993_v29, %v994_v28 }
 0x103   : > { %v997_v37 = vpop.permute.xlu0 %996  ;;  %v987_v38 = vpop.permute.xlu1 %986  ;;  %v420_v39 = vsel %vm1165_vm4, %v408_v33, %v415_v34  ;;  %v419_v40 = vsel %vm1169_vm5, %v404_v35, %v418_v36  ;;  %v422_v48 = vsel %vm1173_vm6, %v415_v34, %v408_v33  ;;  %v421_v56 = vsel %vm1185_vm7, %v418_v36, %v404_v35 }
 0x104   : > { %v999_v42 = vunpack.i.h.bf16 %v997_v37  ;;  %v998_v43 = vunpack.i.l.bf16 %v997_v37  ;;  %v989_v44 = vunpack.i.h.bf16 %v987_v38  ;;  %v988_v45 = vunpack.i.l.bf16 %v987_v38 }
 0x105   : > { %v469_v46 = vpack.c.bf16 %v386_v7, %v420_v39  ;;  %v468_v47 = vpack.c.bf16 %v389_v8, %v419_v40 }
 0x106   : > { %v437_v49 = vsel %vm414_vm2, %v999_v42, %v998_v43  ;;  %v440_v50 = vsel %vm414_vm2, %v998_v43, %v999_v42  ;;  %v427_v51 = vsel %vm403_vm3, %v988_v45, %v989_v44  ;;  %v431_v52 = vsel %vm403_vm3, %v989_v44, %v988_v45 }
 0x107   : > { %495 = vmatprep.subr.bf16.mxu0 %v469_v46  ;;  %v1007_v53 = vpop.permute.xlu0 %1006  ;;  %v1002_v54 = vpop.permute.xlu1 %1001  ;;  %v442_v55 = vsel %vm1165_vm4, %v431_v52, %v437_v49  ;;  %v441_v57 = vsel %vm1169_vm5, %v427_v51, %v440_v50  ;;  %v444_v58 = vsel %vm1173_vm6, %v437_v49, %v431_v52  ;;  %v443_v6 = vsel %vm1185_vm7, %v440_v50, %v427_v51 }
 0x108   : > { %v1009_v59 = vunpack.i.h.bf16 %v1007_v53  ;;  %v1008_v60 = vunpack.i.l.bf16 %v1007_v53  ;;  %v1004_v61 = vunpack.i.h.bf16 %v1002_v54  ;;  %v1003_v62 = vunpack.i.l.bf16 %v1002_v54  ;;  %496 = vmatpush1.bf16.msra.mxu0 %v468_v47 }
 0x109   : > { %v471_v63 = vpack.c.bf16 %v442_v55, %v422_v48  ;;  %v470_v2 = vpack.c.bf16 %v441_v57, %v421_v56  ;;  %v473_v5 = vpack.c.bf16 %v444_v58, %v1125_v0  ;;  %v472_v10 = vpack.c.bf16 %v443_v6, %v1127_v1 }
 0x10a   : > { %v460_v3 = vsel %vm414_vm2, %v1009_v59, %v1008_v60  ;;  %v454_v4 = vsel %vm403_vm3, %v1004_v61, %v1003_v62  ;;  %v463_v7 = vsel %vm414_vm2, %v1008_v60, %v1009_v59  ;;  %v450_v8 = vsel %vm403_vm3, %v1003_v62, %v1004_v61 }
 0x10b   : > { %497 = vmatprep.subr.bf16.mxu0 %v471_v63  ;;  %v465_v9 = vsel %vm1165_vm4, %v454_v4, %v460_v3  ;;  %v464_v12 = vsel %vm1169_vm5, %v450_v8, %v463_v7  ;;  %v467_v15 = vsel %vm1173_vm6, %v460_v3, %v454_v4  ;;  %v466_v16 = vsel %vm1185_vm7, %v463_v7, %v450_v8 }
 0x10c   : > { %498 = vmatpush1.bf16.msra.mxu0 %v470_v2  ;;  %v475_v11 = vpack.c.bf16 %v1143_v13, %v465_v9  ;;  %v474_v19 = vpack.c.bf16 %v1148_v14, %v464_v12  ;;  %v477_v20 = vpack.c.bf16 %v467_v15, %v467_v15  ;;  %v476_v21 = vpack.c.bf16 %v466_v16, %v466_v16 }
 0x10d   : > { %499 = vmatprep.subr.bf16.mxu0 %v473_v5  ;;  %v1063_v52 = vmov 1  }
 0x10e   : > { %v490_v13 = vsel %vm488_vm8, %v476_v21, 0  ;;  %1046 = vset.pattern.permute.xlu1 %v1063_v52 }
 0x110   : > { %500 = vmatpush1.bf16.msra.mxu0 %v472_v10 }
 0x111   : > { %501 = vmatprep.subr.bf16.mxu0 %v475_v11 }
 0x114   : > { %502 = vmatpush1.bf16.msra.mxu0 %v474_v19 }
 0x115   : > { %945 = vmatprep.subr.msk.bf16.mxu0 %vm488_vm8, %v477_v20 }
 0x118   : > { %504 = vmatpush1.bf16.msra.mxu0 %v490_v13  ;;  %v482_v23 = vpop.permute.xlu1 %481 }
 0x11b   : > { %946 = vmatmul.mubr.msk.bf16.vlgmr.msra.gmra.mrb[0].mxu0 %vm484_vm9, %v478_v22 }
 0x11c   : > { %750 = vmatprep.mubr.bf16.mxu0 %v1062_v17 }
 0x1ee   : > { %v529_v14 = vpop.f32.mrb[0].mxu0 }
 0x1ef   : > { %v530_v24 = vadd.f32 %v529_v14, %v482_v23  ;;  %v531_v25 = vpop.f32.mrb[1].mxu0 }
 0x1f0   : > { %v532_v28 = vadd.f32 %v531_v25, %v482_v23  ;;  %v533_v29 = vpop.f32.mrb[2].mxu0 }
 0x1f1   : > { %vm536_vm10 = vcmp.ge.f32.partialorder %v530_v24, 0.0  ;;  %v538_v30 = vmul.f32 0.2, %v530_v24  ;;  %v534_v31 = vpop.f32.mrb[3].mxu0 }
 0x1f2   : > { %vm537_vm11 = vcmp.ge.f32.partialorder %v532_v28, 0.0  ;;  %v539_v33 = vmul.f32 0.2, %v532_v28 }
 0x1f3   : > { %v1228_v34 = vsel %vm536_vm10, %v530_v24, %v538_v30 }
 0x1f4   : > { %v1230_v35 = vsel %vm537_vm11, %v532_v28, %v539_v33  ;;  %543 = vrot.lane.b32.xlu0 %v1228_v34, %s1058_s11 }
 0x1f5   : > { %v1011_v36 = vpack.i.bf16 %v1230_v35, %v1228_v34  ;;  %v1031_v47 = vpack.i.bf16 %v1228_v34, %v1230_v35 }
 0x1f7   : > { %1012 = vrot.lane.b32.xlu1 %v1011_v36, %s1059_s12 }
 0x1f8   : > { %555 = vrot.lane.b32.xlu0 %v1230_v35, %s1058_s11 }
 0x266   : > { %v544_v37 = vpop.permute.xlu0 %543 }
 0x269   : > { %v1013_v38 = vpop.permute.xlu1 %1012 }
 0x26a   : > { %v1015_v39 = vunpack.i.h.bf16 %v1013_v38  ;;  %v1014_v40 = vunpack.i.l.bf16 %v1013_v38  ;;  %v556_v46 = vpop.permute.xlu0 %555 }
 0x26b   : > { %v1246_v48 = vsel %vm392_vm1, %v544_v37, %v556_v46 }
 0x26c   : > { %v551_v42 = vsel %vm385_vm0, %v1014_v40, %v1015_v39  ;;  %v554_v43 = vsel %vm385_vm0, %v544_v37, %v1014_v40  ;;  %v561_v49 = vsel %vm392_vm1, %v556_v46, %v1015_v39 }
 0x26d   : > { %v1026_v44 = vpack.i.bf16 %v554_v43, %v551_v42  ;;  %v1016_v45 = vpack.i.bf16 %v551_v42, %v554_v43  ;;  %v1041_v50 = vpack.i.bf16 %v1246_v48, %v561_v49  ;;  %v1036_v51 = vpack.i.bf16 %v561_v49, %v1246_v48 }
 0x26f   : > { %1027 = vrot.lane.b32.xlu0 %v1026_v44, %s1060_s13  ;;  %1017 = vrot.lane.b32.xlu1 %v1016_v45, %s1061_s14 }
 0x273   : > { %1032 = vrot.lane.b32.xlu0 %v1031_v47, %s1060_s13  ;;  %1022 = vrot.lane.b32.xlu1 %v1011_v36, %s1061_s14 }
 0x277   : > { %1042 = vrot.lane.b32.xlu0 %v1041_v50, %s1060_s13  ;;  %1037 = vrot.lane.b32.xlu1 %v1036_v51, %s1061_s14  ;;  %s333_s13 = scalar_lea.vmem %s1340_s7, %s1119_s29 }
 0x27b   : > { %642 = vperm.xlu1 %1046, %v1162_v18   ;;  %705 = vperm.xlu0 %1047, %v1162_v18  }
 0x2e1   : > { %v1018_v53 = vpop.permute.xlu1 %1017  ;;  %v1028_v54 = vpop.permute.xlu0 %1027 }
 0x2e2   : > { %v1020_v55 = vunpack.i.h.bf16 %v1018_v53  ;;  %v1019_v56 = vunpack.i.l.bf16 %v1018_v53  ;;  %v1030_v57 = vunpack.i.h.bf16 %v1028_v54  ;;  %v1029_v58 = vunpack.i.l.bf16 %v1028_v54 }
 0x2e4   : > { %v571_v59 = vsel %vm403_vm3, %v1020_v55, %v1019_v56  ;;  %v577_v60 = vsel %vm414_vm2, %v1030_v57, %v1029_v58  ;;  %v567_v61 = vsel %vm403_vm3, %v1019_v56, %v1020_v55  ;;  %v580_v62 = vsel %vm414_vm2, %v1029_v58, %v1030_v57 }
 0x2e5   : > { %v1023_v63 = vpop.permute.xlu1 %1022  ;;  %v1033_v2 = vpop.permute.xlu0 %1032  ;;  %v582_v3 = vsel %vm1165_vm4, %v571_v59, %v577_v60  ;;  %v581_v4 = vsel %vm1169_vm5, %v567_v61, %v580_v62  ;;  %v584_v11 = vsel %vm1173_vm6, %v577_v60, %v571_v59  ;;  %v583_v22 = vsel %vm1185_vm7, %v580_v62, %v567_v61  ;;  %v701_v61 = vld [vmem:[%s1337_s4] sm:$0xf] }
 0x2e6   : > { %v1025_v5 = vunpack.i.h.bf16 %v1023_v63  ;;  %v1024_v6 = vunpack.i.l.bf16 %v1023_v63  ;;  %v1035_v7 = vunpack.i.h.bf16 %v1033_v2  ;;  %v1034_v8 = vunpack.i.l.bf16 %v1033_v2 }
 0x2e7   : > { %v631_v9 = vpack.c.bf16 %v551_v42, %v582_v3  ;;  %v630_v10 = vpack.c.bf16 %v554_v43, %v581_v4  ;;  %v1065_v62 = vmov 3  }
 0x2e8   : > { %v589_v12 = vsel %vm403_vm3, %v1024_v6, %v1025_v5  ;;  %v593_v15 = vsel %vm403_vm3, %v1025_v5, %v1024_v6  ;;  %v599_v16 = vsel %vm414_vm2, %v1035_v7, %v1034_v8  ;;  %v602_v19 = vsel %vm414_vm2, %v1034_v8, %v1035_v7  ;;  %1048 = vset.pattern.permute.xlu1 %v1065_v62 }
 0x2e9   : > { %654 = vmatprep.subr.bf16.mxu1 %v631_v9  ;;  %v1038_v20 = vpop.permute.xlu1 %1037  ;;  %v1043_v21 = vpop.permute.xlu0 %1042  ;;  %v604_v13 = vsel %vm1165_vm4, %v593_v15, %v599_v16  ;;  %v603_v23 = vsel %vm1169_vm5, %v589_v12, %v602_v19  ;;  %v606_v14 = vsel %vm1173_vm6, %v599_v16, %v593_v15  ;;  %v605_v38 = vsel %vm1185_vm7, %v602_v19, %v589_v12  ;;  %v343_v12 = vld [vmem:[%s328_s25 + $0x8] sm:$0xff] }
 0x2ea   : > { %v1040_v24 = vunpack.i.h.bf16 %v1038_v20  ;;  %v1039_v25 = vunpack.i.l.bf16 %v1038_v20  ;;  %v1045_v28 = vunpack.i.h.bf16 %v1043_v21  ;;  %v1044_v29 = vunpack.i.l.bf16 %v1043_v21  ;;  %655 = vmatpush1.bf16.msra.mxu1 %v630_v10  ;;  %1049 = vset.pattern.permute.xlu0 %v1065_v62 }
 0x2eb   : > { %v633_v30 = vpack.c.bf16 %v604_v13, %v584_v11  ;;  %v632_v31 = vpack.c.bf16 %v603_v23, %v583_v22  ;;  %v635_v37 = vpack.c.bf16 %v606_v14, %v1230_v35  ;;  %v634_v43 = vpack.c.bf16 %v605_v38, %v1228_v34  ;;  %771 = vperm.xlu1 %1048, %v1162_v18   ;;  %v342_v11 = vld [vmem:[%s328_s25] sm:$0xff] }
 0x2ec   : > { %v616_v33 = vsel %vm403_vm3, %v1040_v24, %v1039_v25  ;;  %v622_v36 = vsel %vm414_vm2, %v1045_v28, %v1044_v29  ;;  %v612_v39 = vsel %vm403_vm3, %v1039_v25, %v1040_v24  ;;  %v625_v40 = vsel %vm414_vm2, %v1044_v29, %v1045_v28 }
 0x2ed   : > { %656 = vmatprep.subr.bf16.mxu1 %v633_v30  ;;  %v627_v42 = vsel %vm1165_vm4, %v616_v33, %v622_v36  ;;  %v626_v45 = vsel %vm1169_vm5, %v612_v39, %v625_v40  ;;  %v629_v35 = vsel %vm1173_vm6, %v622_v36, %v616_v33  ;;  %v628_v46 = vsel %vm1185_vm7, %v625_v40, %v612_v39 }
 0x2ee   : > { %657 = vmatpush1.bf16.msra.mxu1 %v632_v31  ;;  %v637_v44 = vpack.c.bf16 %v561_v49, %v627_v42  ;;  %v636_v47 = vpack.c.bf16 %v1246_v48, %v626_v45  ;;  %v639_v50 = vpack.c.bf16 %v629_v35, %v629_v35  ;;  %v638_v26 = vpack.c.bf16 %v628_v46, %v628_v46 }
 0x2ef   : > { %658 = vmatprep.subr.bf16.mxu1 %v635_v37 }
 0x2f0   : > { %v649_v34 = vsel %vm488_vm8, %v638_v26, 0 }
 0x2f2   : > { %659 = vmatpush1.bf16.msra.mxu1 %v634_v43 }
 0x2f3   : > { %660 = vmatprep.subr.bf16.mxu1 %v637_v44 }
 0x2f6   : > { %661 = vmatpush1.bf16.msra.mxu1 %v636_v47 }
 0x2f7   : > { %947 = vmatprep.subr.msk.bf16.mxu1 %vm488_vm8, %v639_v50 }
 0x2fa   : > { %663 = vmatpush1.bf16.msra.mxu1 %v649_v34  ;;  %v643_v41 = vpop.permute.xlu1 %642  ;;  %v706_v63 = vpop.permute.xlu0 %705 }
 0x2fd   : > { %948 = vmatmul.mubr.msk.bf16.vlgmr.msra.gmra.mrb[0].mxu1 %vm484_vm9, %v640_v27 }
 0x2fe   : > { %815 = vmatprep.mubr.bf16.mxu1 %v1062_v17 }
 0x36a   : > { %v772_v22 = vpop.permute.xlu1 %771 }
 0x3d0   : > { %v688_v48 = vpop.f32.mrb[0].mxu1 }
 0x3d1   : > { %v689_v49 = vadd.f32 %v688_v48, %v643_v41  ;;  %v690_v51 = vpop.f32.mrb[1].mxu1 }
 0x3d2   : > { %v691_v52 = vadd.f32 %v690_v51, %v643_v41  ;;  %v692_v53 = vpop.f32.mrb[2].mxu1 }
 0x3d3   : > { %vm695_vm12 = vcmp.ge.f32.partialorder %v689_v49, 0.0  ;;  %v697_v54 = vmul.f32 0.2, %v689_v49  ;;  %v693_v55 = vpop.f32.mrb[3].mxu1 }
 0x3d4   : > { %vm696_vm13 = vcmp.ge.f32.partialorder %v691_v52, 0.0  ;;  %v698_v56 = vmul.f32 0.2, %v691_v52 }
 0x3d5   : > { %v699_v57 = vsel %vm695_vm12, %v689_v49, %v697_v54 }
 0x3d6   : > { %v702_v58 = vpack.c.bf16 %v699_v57, %v699_v57  ;;  %v700_v59 = vsel %vm696_vm13, %v691_v52, %v698_v56 }
 0x3d7   : > { %v703_v60 = vpack.c.bf16 %v700_v59, %v700_v59 }
 0x3d8   : > { %v713_v17 = vsel %vm488_vm8, %v702_v58, 0 }
 0x3d9   : > { %949 = vmatprep.subr.msk.bf16.mxu0 %vm488_vm8, %v703_v60 }
 0x3da   : > { %719 = vmatpush1.bf16.msra.mxu0 %v713_v17 }
 0x3dd   : > { %950 = vmatmul.mubr.msk.bf16.vlgmr.msra.gmra.mrb[4].mxu0 %vm708_vm14, %v701_v61 }
 0x4b0   : > { %v752_v2 = vpop.f32.mrb[4].mxu0 }
 0x4b1   : > { %v753_v3 = vadd.f32 %v752_v2, %v706_v63  ;;  %v754_v4 = vpop.f32.mrb[5].mxu0 }
 0x4b2   : > { %v755_v5 = vadd.f32 %v754_v4, %v706_v63  ;;  %v756_v6 = vpop.f32.mrb[6].mxu0 }
 0x4b3   : > { %v759_v7 = vadd.f32 %v753_v3, %v1127_v1  ;;  %v757_v8 = vpop.f32.mrb[7].mxu0 }
 0x4b4   : > { %v760_v9 = vadd.f32 %v755_v5, %v1125_v0  ;;  %v767_v0 = vld [vmem:[%s1338_s5] sm:$0xf] }
 0x4b5   : > { %vm761_vm15 = vcmp.ge.f32.partialorder %v759_v7, 0.0  ;;  %v763_v10 = vmul.f32 0.2, %v759_v7 }
 0x4b6   : > { %vm762_vm0 = vcmp.ge.f32.partialorder %v760_v9, 0.0  ;;  %v764_v18 = vmul.f32 0.2, %v760_v9 }
 0x4b7   : > { %v765_v15 = vsel %vm761_vm15, %v759_v7, %v763_v10 }
 0x4b8   : > { %v766_v16 = vsel %vm762_vm0, %v760_v9, %v764_v18  ;;  %v768_v19 = vpack.c.bf16 %v765_v15, %v765_v15  ;;  %v828_v20 = vadd.f32 %v765_v15, %v342_v11 }
 0x4b9   : > { %v769_v21 = vpack.c.bf16 %v766_v16, %v766_v16  ;;  %v829_v1 = vadd.f32 %v766_v16, %v343_v12 }
 0x4ba   : > { %v778_v13 = vsel %vm488_vm8, %v768_v19, 0  ;;  %830 = vst [vmem:[%s338_s30] sm:$0xff] %v828_v20 }
 0x4bb   : > { %951 = vmatprep.subr.msk.bf16.mxu1 %vm488_vm8, %v769_v21  ;;  %831 = vst [vmem:[%s338_s30 + $0x8] sm:$0xff] %v829_v1 }
 0x4bc   : > { %784 = vmatpush1.bf16.msra.mxu1 %v778_v13 }
 0x4bf   : > { %952 = vmatmul.mubr.msk.bf16.vlgmr.msra.gmra.mrb[4].mxu1 %vm708_vm14, %v767_v0 }
 0x592   : > { %v817_v23 = vpop.f32.mrb[4].mxu1 }
 0x593   : > { %v819_v14 = vpop.f32.mrb[5].mxu1  ;;  %v818_v24 = vadd.f32 %v817_v23, %v772_v22 }
 0x594   : > { %v821_v25 = vpop.f32.mrb[6].mxu1  ;;  %v820_v28 = vadd.f32 %v819_v14, %v772_v22 }
 0x595   : > { %v824_v29 = vadd.f32 %v818_v24, %v342_v11  ;;  %v822_v30 = vpop.f32.mrb[7].mxu1 }
 0x596   : > { %v825_v31 = vadd.f32 %v820_v28, %v343_v12 }
 0x597   : > { %826 = vst [vmem:[%s333_s13] sm:$0xff] %v824_v29 }
 0x598   : > { %827 = vst [vmem:[%s333_s13 + $0x8] sm:$0xff] %v825_v31 }
 0x599 PF: > { %s19_s27 = sadd.s32 1, %s1056_s27  }
 0x59a   : > { %p16_p4 = scmp.ge.s32.totalorder %s19_s27, 4  }
 0x59c   :  { %18 = sbr.rel (!%p16_p4) target bundleno = 1 (0x1), region = 93 }

// kernel: _lambda_.3
= control target key start
LH: loop header
LB: loop body
LE: loop exit
PB: predicated region body
PF: predicated region fallthrough
CT: control target
= control target key end

     0   :  { %14 = vsyncpa [#allocation3], 0  ;;  %s1519_s0 = inlined_call_operand.vmem [shape: f32[16,256], index: 0, kind: input, shape index: {}]   ;;  %s1520_s1 = inlined_call_operand.vmem [shape: f32[16,256], index: 1, kind: input, shape index: {}]   ;;  %s1521_s2 = inlined_call_operand.vmem [shape: bf16[8,72], index: 2, kind: input, shape index: {}]   ;;  %s1522_s3 = inlined_call_operand.vmem [shape: bf16[8,72], index: 3, kind: input, shape index: {}]   ;;  %s1523_s4 = inlined_call_operand.vmem [shape: bf16[8,8], index: 4, kind: input, shape index: {}]   ;;  %s1524_s5 = inlined_call_operand.vmem [shape: bf16[8,8], index: 5, kind: input, shape index: {}]   ;;  %s1525_s6 = inlined_call_operand.vmem [shape: f32[8,4], index: 6, kind: input, shape index: {}]   ;;  %s1526_s7 = inlined_call_operand.vmem [shape: f32[16,256], index: 7, kind: output, shape index: {0}]   ;;  %s1527_s8 = inlined_call_operand.hbm [shape: f32[16,256], index: 8, kind: output, shape index: {1}]  }
   0x1   :  { %16 = vsyncpa [#allocation3 + $0x1], 0  ;;  %s1217_s27 = smov 0   ;;  %s1219_s28 = smov 0  }
   0x2   :  { %s1221_s29 = smov 0   ;;  %s1223_s30 = smov 0  }
   0x3 LB: > { %s1238_s9 = sadd.s32 4294967295, %s1161_s30   ;;  %s949_s10 = sadd.s32 4294967294, %s1161_s30   ;;  %s1161_s30 = sphi %s1223_s30, %s1541_s30   ;;  %s1157_s29 = sphi %s1221_s29, %s1540_s29   ;;  %s1153_s28 = sphi %s1219_s28, %s1539_s28   ;;  %s1149_s27 = sphi %s1217_s27, %s1538_s27  }
   0x4   : > { %s1242_s11 = sadd.s32 1, %s1161_s30   ;;  %s212_s12 = sadd.s32 1, %s1157_s29 }
   0x5   : > { %s209_s13 = ssub.s32 %s1161_s30, %s1242_s11  ;;  %p222_p0 = scmp.ne.s32.totalorder %s1157_s29, %s1153_s28 }
   0x6   : > { %p210_p1 = scmp.eq.s32.totalorder %s209_s13, 0  ;;  %p223_p2 = scmp.eq.s32.totalorder %s1238_s9, 1 }
   0x7   : > { %p228_p3 = scmp.ne.s32.totalorder %s1153_s28, %s1149_s27  ;;  %p229_p4 = scmp.eq.s32.totalorder %s949_s10, 1 }
   0x8   : > { %s1253_s14 = scalar_select %p210_p1, %s1157_s29, %s212_s12  }
   0x9   : > { %p1255_p5 = por %p223_p2, %p222_p0  ;;  %p1259_p6 = por %p229_p4, %p228_p3 }
   0xa   : > { %p952_p7 = scmp.ge.s32.totalorder %s1161_s30, 1  ;;  %p278_p8 = scmp.lt.s32.totalorder %s1161_s30, 3 }
   0xc   : > { %p279_p9 = pnand %p952_p7, %p278_p8 }
   0xd   : > { %p322_p10 = scmp.lt.s32.totalorder (!%p279_p9), %s1238_s9, 1  ;;  %s1163_s22 = smov (!%p279_p9), 112   ;;  %vm383_vm0 = vcmask (!%p279_p9), 130048   ;;  %vm390_vm1 = vcmask (!%p279_p9), 916480   ;;  %v1167_v17 = vmov (!%p279_p9), 0   ;;  %v1310_v18 = vld [vmem:[%s1525_s6] sm:$0xff] (!%p279_p9)  ;;  %v343_v19 = vlaneseq (!%p279_p9) }
   0xe   : > { %282 = sbr.rel (%p279_p9) target bundleno = 1442 (0x5a2), region = 48  ;;  %s1164_s23 = smov (!%p279_p9), 16   ;;  %525 = vmatprep.mubr.bf16.mxu0 (!%p279_p9), %v1167_v17  ;;  %1059 = vset.pattern.permute.xlu1 (!%p279_p9), %v1167_v17  ;;  %vm412_vm2 = vcmask (!%p279_p9), 7168   ;;  %vm401_vm3 = vcmask (!%p279_p9), 1039360   ;;  %vm486_vm8 = vcmask (!%p279_p9), 1043456   ;;  %vm482_vm9 = vcmask (!%p279_p9), 588800  }
   0xf   : > { %s1165_s24 = smov (!%p279_p9), 1   ;;  %s1166_s25 = smov (!%p279_p9), 127   ;;  %684 = vmatprep.mubr.bf16.mxu1 (!%p279_p9), %v1167_v17  ;;  %v344_v20 = vand.u32 (!%p279_p9), 127, %v343_v19  ;;  %v638_v27 = vld [vmem:[%s1522_s3] sm:$0xf] (!%p279_p9)  ;;  %v1169_v32 = vmov (!%p279_p9), 2  }
  0x10   : > { %1096 = vset.pattern.permute.xlu0 (!%p279_p9), %v1169_v32  ;;  %vm706_vm14 = vcmask (!%p279_p9), 64512  }
  0x11   : > { %v345_v21 = vadd.s32 (!%p279_p9), 128, %v344_v20  ;;  %v350_v23 = vand.u32 (!%p279_p9), 15, %v344_v20 }
  0x13   : > { %v357_v22 = vand.u32 (!%p279_p9), 15, %v345_v21  ;;  %vm1317_vm5 = vcmp.eq.s32.totalorder (!%p279_p9), %v350_v23, 0  ;;  %vm1333_vm7 = vcmp.eq.s32.totalorder (!%p279_p9), %v350_v23, 15 }
  0x15   : > { %s323_s17 = scalar_select %p322_p10, %s1238_s9, 1  ;;  %vm1313_vm4 = vcmp.eq.s32.totalorder %v357_v22, 0  ;;  %vm1321_vm6 = vcmp.eq.s32.totalorder %v357_v22, 15  ;;  %v476_v22 = vld [vmem:[%s1521_s2] sm:$0xf] }
  0x17   : > { %s1267_s18 = sshll.u32 %s323_s17, 4  ;;  %s976_s17 = sshll.u32 %s1238_s9, 8 }
  0x18   : > { %s326_s21 = scalar_lea.vmem %s1519_s0, %s1267_s18 }
  0x19   : > { %v1273_v0 = vld [vmem:[%s326_s21 + $0x8] sm:$0xff]  ;;  %v1275_v1 = vld [vmem:[%s326_s21] sm:$0xff] }
  0x1a   : > { %388 = vrot.lane.b32.xlu1 %v1273_v0, %s1163_s22  ;;  %375 = vrot.lane.b32.xlu0 %v1275_v1, %s1163_s22  ;;  %v1024_v2 = vpack.i.bf16 %v1273_v0, %v1275_v1  ;;  %v1044_v11 = vpack.i.bf16 %v1275_v1, %v1273_v0 }
  0x1e   : > { %1025 = vrot.lane.b32.xlu0 %v1024_v2, %s1164_s23 }
  0x8c   : > { %v376_v3 = vpop.permute.xlu0 %375  ;;  %v389_v12 = vpop.permute.xlu1 %388 }
  0x8d   : > { %v1296_v14 = vsel %vm390_vm1, %v376_v3, %v389_v12 }
  0x90   : > { %v1026_v4 = vpop.permute.xlu0 %1025 }
  0x91   : > { %v1028_v5 = vunpack.i.h.bf16 %v1026_v4  ;;  %v1027_v6 = vunpack.i.l.bf16 %v1026_v4 }
  0x93   : > { %v384_v7 = vsel %vm383_vm0, %v1027_v6, %v1028_v5  ;;  %v387_v8 = vsel %vm383_vm0, %v376_v3, %v1027_v6  ;;  %v1291_v13 = vsel %vm390_vm1, %v389_v12, %v1028_v5 }
  0x94   : > { %v1039_v9 = vpack.i.bf16 %v387_v8, %v384_v7  ;;  %v1029_v10 = vpack.i.bf16 %v384_v7, %v387_v8  ;;  %v1054_v15 = vpack.i.bf16 %v1296_v14, %v1291_v13  ;;  %v1049_v16 = vpack.i.bf16 %v1291_v13, %v1296_v14 }
  0x96   : > { %1040 = vrot.lane.b32.xlu0 %v1039_v9, %s1165_s24  ;;  %1030 = vrot.lane.b32.xlu1 %v1029_v10, %s1166_s25 }
  0x9a   : > { %1045 = vrot.lane.b32.xlu0 %v1044_v11, %s1165_s24  ;;  %1035 = vrot.lane.b32.xlu1 %v1024_v2, %s1166_s25 }
  0x9e   : > { %1055 = vrot.lane.b32.xlu0 %v1054_v15, %s1165_s24  ;;  %1050 = vrot.lane.b32.xlu1 %v1049_v16, %s1166_s25 }
  0xa2   : > { %479 = vperm.xlu1 %1059, %v1310_v18  }
 0x108   : > { %v1041_v24 = vpop.permute.xlu0 %1040  ;;  %v1031_v25 = vpop.permute.xlu1 %1030 }
 0x109   : > { %v1043_v28 = vunpack.i.h.bf16 %v1041_v24  ;;  %v1042_v29 = vunpack.i.l.bf16 %v1041_v24  ;;  %v1033_v30 = vunpack.i.h.bf16 %v1031_v25  ;;  %v1032_v31 = vunpack.i.l.bf16 %v1031_v25 }
 0x10b   : > { %v406_v33 = vsel %vm401_vm3, %v1033_v30, %v1032_v31  ;;  %v413_v34 = vsel %vm412_vm2, %v1043_v28, %v1042_v29  ;;  %v402_v35 = vsel %vm401_vm3, %v1032_v31, %v1033_v30  ;;  %v416_v36 = vsel %vm412_vm2, %v1042_v29, %v1043_v28 }
 0x10c   : > { %v1046_v37 = vpop.permute.xlu0 %1045  ;;  %v1036_v38 = vpop.permute.xlu1 %1035  ;;  %v418_v39 = vsel %vm1313_vm4, %v406_v33, %v413_v34  ;;  %v417_v40 = vsel %vm1317_vm5, %v402_v35, %v416_v36  ;;  %v420_v48 = vsel %vm1321_vm6, %v413_v34, %v406_v33  ;;  %v419_v56 = vsel %vm1333_vm7, %v416_v36, %v402_v35 }
 0x10d   : > { %v1048_v42 = vunpack.i.h.bf16 %v1046_v37  ;;  %v1047_v43 = vunpack.i.l.bf16 %v1046_v37  ;;  %v1038_v44 = vunpack.i.h.bf16 %v1036_v38  ;;  %v1037_v45 = vunpack.i.l.bf16 %v1036_v38 }
 0x10e   : > { %v467_v46 = vpack.c.bf16 %v384_v7, %v418_v39  ;;  %v466_v47 = vpack.c.bf16 %v387_v8, %v417_v40 }
 0x10f   : > { %v435_v49 = vsel %vm412_vm2, %v1048_v42, %v1047_v43  ;;  %v438_v50 = vsel %vm412_vm2, %v1047_v43, %v1048_v42  ;;  %v425_v51 = vsel %vm401_vm3, %v1037_v45, %v1038_v44  ;;  %v429_v52 = vsel %vm401_vm3, %v1038_v44, %v1037_v45 }
 0x110   : > { %493 = vmatprep.subr.bf16.mxu0 %v467_v46  ;;  %v1056_v53 = vpop.permute.xlu0 %1055  ;;  %v1051_v54 = vpop.permute.xlu1 %1050  ;;  %v440_v55 = vsel %vm1313_vm4, %v429_v52, %v435_v49  ;;  %v439_v57 = vsel %vm1317_vm5, %v425_v51, %v438_v50  ;;  %v442_v58 = vsel %vm1321_vm6, %v435_v49, %v429_v52  ;;  %v441_v6 = vsel %vm1333_vm7, %v438_v50, %v425_v51 }
 0x111   : > { %v1058_v59 = vunpack.i.h.bf16 %v1056_v53  ;;  %v1057_v60 = vunpack.i.l.bf16 %v1056_v53  ;;  %v1053_v61 = vunpack.i.h.bf16 %v1051_v54  ;;  %v1052_v62 = vunpack.i.l.bf16 %v1051_v54  ;;  %494 = vmatpush1.bf16.msra.mxu0 %v466_v47 }
 0x112   : > { %v469_v63 = vpack.c.bf16 %v440_v55, %v420_v48  ;;  %v468_v2 = vpack.c.bf16 %v439_v57, %v419_v56  ;;  %v471_v5 = vpack.c.bf16 %v442_v58, %v1273_v0  ;;  %v470_v10 = vpack.c.bf16 %v441_v6, %v1275_v1 }
 0x113   : > { %v458_v3 = vsel %vm412_vm2, %v1058_v59, %v1057_v60  ;;  %v452_v4 = vsel %vm401_vm3, %v1053_v61, %v1052_v62  ;;  %v461_v7 = vsel %vm412_vm2, %v1057_v60, %v1058_v59  ;;  %v448_v8 = vsel %vm401_vm3, %v1052_v62, %v1053_v61 }
 0x114   : > { %495 = vmatprep.subr.bf16.mxu0 %v469_v63  ;;  %v463_v9 = vsel %vm1313_vm4, %v452_v4, %v458_v3  ;;  %v462_v12 = vsel %vm1317_vm5, %v448_v8, %v461_v7  ;;  %v465_v15 = vsel %vm1321_vm6, %v458_v3, %v452_v4  ;;  %v464_v16 = vsel %vm1333_vm7, %v461_v7, %v448_v8 }
 0x115   : > { %496 = vmatpush1.bf16.msra.mxu0 %v468_v2  ;;  %v473_v11 = vpack.c.bf16 %v1291_v13, %v463_v9  ;;  %v472_v19 = vpack.c.bf16 %v1296_v14, %v462_v12  ;;  %v475_v20 = vpack.c.bf16 %v465_v15, %v465_v15  ;;  %v474_v21 = vpack.c.bf16 %v464_v16, %v464_v16 }
 0x116   : > { %497 = vmatprep.subr.bf16.mxu0 %v471_v5  ;;  %v1168_v52 = vmov 1  }
 0x117   : > { %v488_v13 = vsel %vm486_vm8, %v474_v21, 0  ;;  %1095 = vset.pattern.permute.xlu1 %v1168_v52 }
 0x119   : > { %498 = vmatpush1.bf16.msra.mxu0 %v470_v10 }
 0x11a   : > { %499 = vmatprep.subr.bf16.mxu0 %v473_v11 }
 0x11d   : > { %500 = vmatpush1.bf16.msra.mxu0 %v472_v19 }
 0x11e   : > { %960 = vmatprep.subr.msk.bf16.mxu0 %vm486_vm8, %v475_v20 }
 0x121   : > { %502 = vmatpush1.bf16.msra.mxu0 %v488_v13  ;;  %v480_v23 = vpop.permute.xlu1 %479 }
 0x124   : > { %961 = vmatmul.mubr.msk.bf16.vlgmr.msra.gmra.mrb[0].mxu0 %vm482_vm9, %v476_v22 }
 0x125   : > { %748 = vmatprep.mubr.bf16.mxu0 %v1167_v17 }
 0x1f7   : > { %v527_v14 = vpop.f32.mrb[0].mxu0 }
 0x1f8   : > { %v528_v24 = vadd.f32 %v527_v14, %v480_v23  ;;  %v529_v25 = vpop.f32.mrb[1].mxu0 }
 0x1f9   : > { %v530_v28 = vadd.f32 %v529_v25, %v480_v23  ;;  %v531_v29 = vpop.f32.mrb[2].mxu0 }
 0x1fa   : > { %vm534_vm10 = vcmp.ge.f32.partialorder %v528_v24, 0.0  ;;  %v536_v30 = vmul.f32 0.2, %v528_v24  ;;  %v532_v31 = vpop.f32.mrb[3].mxu0 }
 0x1fb   : > { %vm535_vm11 = vcmp.ge.f32.partialorder %v530_v28, 0.0  ;;  %v537_v33 = vmul.f32 0.2, %v530_v28 }
 0x1fc   : > { %v1376_v34 = vsel %vm534_vm10, %v528_v24, %v536_v30 }
 0x1fd   : > { %v1378_v35 = vsel %vm535_vm11, %v530_v28, %v537_v33  ;;  %541 = vrot.lane.b32.xlu0 %v1376_v34, %s1163_s22 }
 0x1fe   : > { %v1060_v36 = vpack.i.bf16 %v1378_v35, %v1376_v34  ;;  %v1080_v47 = vpack.i.bf16 %v1376_v34, %v1378_v35 }
 0x200   : > { %1061 = vrot.lane.b32.xlu1 %v1060_v36, %s1164_s23  ;;  %s1477_s23 = scalar_lea.hbm %s1527_s8, %s976_s17 }
 0x201   : > { %553 = vrot.lane.b32.xlu0 %v1378_v35, %s1163_s22  ;;  %s319_s22 = sand.u32 1, %s1153_s28  }
 0x202   : > { %s953_s26 = sshll.u32 %s319_s22, 4 }
 0x203   : > { %s321_s10 = scalar_lea.vmem [#allocation2], %s953_s26  ;;  %s1171_s26 = smov [#allocation2]  }
 0x204   : > { %s853_s19 = sshll.u32 %s321_s10, 4  ;;  %s1103_s12 = sshll.u32 %s1171_s26, 4  ;;  %s854_s19 = int_to_ptr.vmem [resolvable:$true] %s853_s19  ;;  %s1104_s12 = int_to_ptr.vmem [resolvable:$false] %s1103_s12 }
 0x205   : > { %s1105_s13 = scalar_lea.vmem %s1104_s12, 512  ;;  %p1106_p0 = scmp.lt.s32.totalorder %s854_s19, %s1104_s12 }
 0x26f   : > { %v542_v37 = vpop.permute.xlu0 %541 }
 0x272   : > { %v1062_v38 = vpop.permute.xlu1 %1061 }
 0x273   : > { %v1064_v39 = vunpack.i.h.bf16 %v1062_v38  ;;  %v1063_v40 = vunpack.i.l.bf16 %v1062_v38  ;;  %v554_v46 = vpop.permute.xlu0 %553 }
 0x274   : > { %v1394_v48 = vsel %vm390_vm1, %v542_v37, %v554_v46 }
 0x275   : > { %v549_v42 = vsel %vm383_vm0, %v1063_v40, %v1064_v39  ;;  %v552_v43 = vsel %vm383_vm0, %v542_v37, %v1063_v40  ;;  %v559_v49 = vsel %vm390_vm1, %v554_v46, %v1064_v39 }
 0x276   : > { %v1075_v44 = vpack.i.bf16 %v552_v43, %v549_v42  ;;  %v1065_v45 = vpack.i.bf16 %v549_v42, %v552_v43  ;;  %v1090_v50 = vpack.i.bf16 %v1394_v48, %v559_v49  ;;  %v1085_v51 = vpack.i.bf16 %v559_v49, %v1394_v48 }
 0x278   : > { %1076 = vrot.lane.b32.xlu0 %v1075_v44, %s1165_s24  ;;  %1066 = vrot.lane.b32.xlu1 %v1065_v45, %s1166_s25 }
 0x27c   : > { %1081 = vrot.lane.b32.xlu0 %v1080_v47, %s1165_s24  ;;  %1071 = vrot.lane.b32.xlu1 %v1060_v36, %s1166_s25 }
 0x280   : > { %1091 = vrot.lane.b32.xlu0 %v1090_v50, %s1165_s24  ;;  %1086 = vrot.lane.b32.xlu1 %v1085_v51, %s1166_s25  ;;  %s331_s25 = scalar_lea.vmem %s1520_s1, %s1267_s18  ;;  %s836_s24 = scalar_lea.sflag [#allocation3], %s319_s22 }
 0x284   : > { %640 = vperm.xlu1 %1095, %v1310_v18   ;;  %703 = vperm.xlu0 %1096, %v1310_v18  }
 0x2ea   : > { %v1067_v53 = vpop.permute.xlu1 %1066  ;;  %v1077_v54 = vpop.permute.xlu0 %1076 }
 0x2eb   : > { %v1069_v55 = vunpack.i.h.bf16 %v1067_v53  ;;  %v1068_v56 = vunpack.i.l.bf16 %v1067_v53  ;;  %v1079_v57 = vunpack.i.h.bf16 %v1077_v54  ;;  %v1078_v58 = vunpack.i.l.bf16 %v1077_v54 }
 0x2ed   : > { %v569_v59 = vsel %vm401_vm3, %v1069_v55, %v1068_v56  ;;  %v575_v60 = vsel %vm412_vm2, %v1079_v57, %v1078_v58  ;;  %v565_v61 = vsel %vm401_vm3, %v1068_v56, %v1069_v55  ;;  %v578_v62 = vsel %vm412_vm2, %v1078_v58, %v1079_v57 }
 0x2ee   : > { %v1072_v63 = vpop.permute.xlu1 %1071  ;;  %v1082_v2 = vpop.permute.xlu0 %1081  ;;  %v580_v3 = vsel %vm1313_vm4, %v569_v59, %v575_v60  ;;  %v579_v4 = vsel %vm1317_vm5, %v565_v61, %v578_v62  ;;  %v582_v11 = vsel %vm1321_vm6, %v575_v60, %v569_v59  ;;  %v581_v22 = vsel %vm1333_vm7, %v578_v62, %v565_v61  ;;  %v699_v61 = vld [vmem:[%s1523_s4] sm:$0xf] }
 0x2ef   : > { %v1074_v5 = vunpack.i.h.bf16 %v1072_v63  ;;  %v1073_v6 = vunpack.i.l.bf16 %v1072_v63  ;;  %v1084_v7 = vunpack.i.h.bf16 %v1082_v2  ;;  %v1083_v8 = vunpack.i.l.bf16 %v1082_v2 }
 0x2f0   : > { %v629_v9 = vpack.c.bf16 %v549_v42, %v580_v3  ;;  %v628_v10 = vpack.c.bf16 %v552_v43, %v579_v4  ;;  %v1170_v62 = vmov 3  }
 0x2f1   : > { %v587_v12 = vsel %vm401_vm3, %v1073_v6, %v1074_v5  ;;  %v591_v15 = vsel %vm401_vm3, %v1074_v5, %v1073_v6  ;;  %v597_v16 = vsel %vm412_vm2, %v1084_v7, %v1083_v8  ;;  %v600_v19 = vsel %vm412_vm2, %v1083_v8, %v1084_v7  ;;  %1097 = vset.pattern.permute.xlu1 %v1170_v62 }
 0x2f2   : > { %652 = vmatprep.subr.bf16.mxu1 %v629_v9  ;;  %v1087_v20 = vpop.permute.xlu1 %1086  ;;  %v1092_v21 = vpop.permute.xlu0 %1091  ;;  %v602_v13 = vsel %vm1313_vm4, %v591_v15, %v597_v16  ;;  %v601_v23 = vsel %vm1317_vm5, %v587_v12, %v600_v19  ;;  %v604_v14 = vsel %vm1321_vm6, %v597_v16, %v591_v15  ;;  %v603_v38 = vsel %vm1333_vm7, %v600_v19, %v587_v12  ;;  %v341_v12 = vld [vmem:[%s331_s25 + $0x8] sm:$0xff] }
 0x2f3   : > { %v1089_v24 = vunpack.i.h.bf16 %v1087_v20  ;;  %v1088_v25 = vunpack.i.l.bf16 %v1087_v20  ;;  %v1094_v28 = vunpack.i.h.bf16 %v1092_v21  ;;  %v1093_v29 = vunpack.i.l.bf16 %v1092_v21  ;;  %653 = vmatpush1.bf16.msra.mxu1 %v628_v10  ;;  %1098 = vset.pattern.permute.xlu0 %v1170_v62  ;;  %v340_v10 = vld [vmem:[%s331_s25] sm:$0xff]  ;;  %s1099_s25 = scalar_lea.vmem %s854_s19, 256 }
 0x2f4   : > { %v631_v30 = vpack.c.bf16 %v602_v13, %v582_v11  ;;  %v630_v31 = vpack.c.bf16 %v601_v23, %v581_v22  ;;  %v633_v37 = vpack.c.bf16 %v604_v14, %v1378_v35  ;;  %v632_v43 = vpack.c.bf16 %v603_v38, %v1376_v34  ;;  %769 = vperm.xlu1 %1097, %v1310_v18   ;;  %p1100_p11 = scmp.ne.s32.totalorder %s854_s19, %s1099_s25  ;;  %p1107_p1 = scmp.lt.s32.totalorder %s1105_s13, %s1099_s25 }
 0x2f5   : > { %v614_v33 = vsel %vm401_vm3, %v1089_v24, %v1088_v25  ;;  %v620_v36 = vsel %vm412_vm2, %v1094_v28, %v1093_v29  ;;  %v610_v39 = vsel %vm401_vm3, %v1088_v25, %v1089_v24  ;;  %v623_v40 = vsel %vm412_vm2, %v1093_v29, %v1094_v28 }
 0x2f6   : > { %654 = vmatprep.subr.bf16.mxu1 %v631_v30  ;;  %v625_v42 = vsel %vm1313_vm4, %v614_v33, %v620_v36  ;;  %v624_v45 = vsel %vm1317_vm5, %v610_v39, %v623_v40  ;;  %v627_v35 = vsel %vm1321_vm6, %v620_v36, %v614_v33  ;;  %v626_v46 = vsel %vm1333_vm7, %v623_v40, %v610_v39  ;;  %p1101_p12 = pnand %p1100_p11, %p1255_p5  ;;  %p1108_p2 = por %p1107_p1, %p1106_p0 }
 0x2f7   : > { %655 = vmatpush1.bf16.msra.mxu1 %v630_v31  ;;  %v635_v44 = vpack.c.bf16 %v559_v49, %v625_v42  ;;  %v634_v47 = vpack.c.bf16 %v1394_v48, %v624_v45  ;;  %v637_v50 = vpack.c.bf16 %v627_v35, %v627_v35  ;;  %v636_v26 = vpack.c.bf16 %v626_v46, %v626_v46 }
 0x2f8   : > { %656 = vmatprep.subr.bf16.mxu1 %v633_v37  ;;  %p1102_p13 = pneg %p1101_p12 }
 0x2f9   : > { %v647_v34 = vsel %vm486_vm8, %v636_v26, 0 }
 0x2fa   : > { %p1109_p3 = pnand %p1108_p2, %p1102_p13 }
 0x2fb   : > { %657 = vmatpush1.bf16.msra.mxu1 %v632_v43 }
 0x2fc   : > { %658 = vmatprep.subr.bf16.mxu1 %v635_v44 }
 0x2ff   : > { %659 = vmatpush1.bf16.msra.mxu1 %v634_v47 }
 0x300   : > { %962 = vmatprep.subr.msk.bf16.mxu1 %vm486_vm8, %v637_v50 }
 0x303   : > { %661 = vmatpush1.bf16.msra.mxu1 %v647_v34  ;;  %v641_v41 = vpop.permute.xlu1 %640  ;;  %v704_v63 = vpop.permute.xlu0 %703 }
 0x306   : > { %963 = vmatmul.mubr.msk.bf16.vlgmr.msra.gmra.mrb[0].mxu1 %vm482_vm9, %v638_v27 }
 0x307   : > { %813 = vmatprep.mubr.bf16.mxu1 %v1167_v17 }
 0x3d9   : > { %v686_v48 = vpop.f32.mrb[0].mxu1 }
 0x3da   : > { %v687_v49 = vadd.f32 %v686_v48, %v641_v41  ;;  %v688_v51 = vpop.f32.mrb[1].mxu1 }
 0x3db   : > { %v689_v52 = vadd.f32 %v688_v51, %v641_v41  ;;  %v690_v53 = vpop.f32.mrb[2].mxu1 }
 0x3dc   : > { %vm693_vm12 = vcmp.ge.f32.partialorder %v687_v49, 0.0  ;;  %v695_v54 = vmul.f32 0.2, %v687_v49  ;;  %v691_v55 = vpop.f32.mrb[3].mxu1 }
 0x3dd   : > { %vm694_vm13 = vcmp.ge.f32.partialorder %v689_v52, 0.0  ;;  %v696_v56 = vmul.f32 0.2, %v689_v52 }
 0x3de   : > { %v697_v57 = vsel %vm693_vm12, %v687_v49, %v695_v54 }
 0x3df   : > { %v700_v58 = vpack.c.bf16 %v697_v57, %v697_v57  ;;  %v698_v59 = vsel %vm694_vm13, %v689_v52, %v696_v56 }
 0x3e0   : > { %v701_v17 = vpack.c.bf16 %v698_v59, %v698_v59 }
 0x3e1   : > { %v711_v60 = vsel %vm486_vm8, %v700_v58, 0 }
 0x3e2   : > { %964 = vmatprep.subr.msk.bf16.mxu0 %vm486_vm8, %v701_v17 }
 0x3e3   : > { %717 = vmatpush1.bf16.msra.mxu0 %v711_v60 }
 0x3e6   : > { %965 = vmatmul.mubr.msk.bf16.vlgmr.msra.gmra.mrb[4].mxu0 %vm706_vm14, %v699_v61 }
 0x4b9   : > { %v750_v2 = vpop.f32.mrb[4].mxu0 }
 0x4ba   : > { %v751_v3 = vadd.f32 %v750_v2, %v704_v63  ;;  %v752_v4 = vpop.f32.mrb[5].mxu0 }
 0x4bb   : > { %v753_v5 = vadd.f32 %v752_v4, %v704_v63  ;;  %v754_v6 = vpop.f32.mrb[6].mxu0 }
 0x4bc   : > { %v757_v7 = vadd.f32 %v751_v3, %v1275_v1  ;;  %v755_v8 = vpop.f32.mrb[7].mxu0 }
 0x4bd   : > { %v758_v9 = vadd.f32 %v753_v5, %v1273_v0  ;;  %v765_v0 = vld [vmem:[%s1524_s5] sm:$0xf] }
 0x4be   : > { %vm759_vm15 = vcmp.ge.f32.partialorder %v757_v7, 0.0  ;;  %v761_v18 = vmul.f32 0.2, %v757_v7 }
 0x4bf   : > { %vm760_vm0 = vcmp.ge.f32.partialorder %v758_v9, 0.0  ;;  %v762_v11 = vmul.f32 0.2, %v758_v9 }
 0x4c0   : > { %v763_v15 = vsel %vm759_vm15, %v757_v7, %v761_v18 }
 0x4c1   : > { %v764_v16 = vsel %vm760_vm0, %v758_v9, %v762_v11  ;;  %v766_v19 = vpack.c.bf16 %v763_v15, %v763_v15  ;;  %v826_v20 = vadd.f32 %v763_v15, %v340_v10 }
 0x4c2   : > { %v767_v21 = vpack.c.bf16 %v764_v16, %v764_v16  ;;  %v827_v13 = vadd.f32 %v764_v16, %v341_v12 }
 0x4c3   : > { %v776_v1 = vsel %vm486_vm8, %v766_v19, 0  ;;  %828 = vst [vmem:[%s321_s10] sm:$0xff] %v826_v20 }
 0x4c4   : > { %966 = vmatprep.subr.msk.bf16.mxu1 %vm486_vm8, %v767_v21  ;;  %829 = vst [vmem:[%s321_s10 + $0x8] sm:$0xff] %v827_v13 }
 0x4c5   : > { %782 = vmatpush1.bf16.msra.mxu1 %v776_v1 }
 0x4c8   : > { %967 = vmatmul.mubr.msk.bf16.vlgmr.msra.gmra.mrb[4].mxu1 %vm706_vm14, %v765_v0 }
 0x4c9   : > { %1112 = shalt.err (!%p1109_p3)
}
 0x4ca   : > { %s1113_s9 = scalar_lea.hbm %s1477_s23, 256  ;;  %s1117_s17 = scalar_lea.hbm %s1527_s8, 512 }
 0x4cb   : > { %p1114_p4 = scmp.ne.s32.totalorder %s1477_s23, %s1113_s9  ;;  %p1118_p9 = scmp.lt.u32.totalorder %s1477_s23, %s1527_s8 }
 0x4cc   : > { %p1119_p10 = scmp.lt.u32.totalorder %s1117_s17, %s1113_s9  ;;  %p1121_p12 = scmp.lt.u32.totalorder %s1113_s9, %s1477_s23 }
 0x4cd   : > { %p1115_p7 = pnand %p1114_p4, %p1255_p5 }
 0x4ce   : > { %p1120_p11 = por %p1119_p10, %p1118_p9 }
 0x4cf   : > { %p1116_p8 = pneg %p1115_p7 }
 0x4d0   : > { %p1122_p13 = por %p1121_p12, %p1120_p11 }
 0x4d2   : > { %p1123_p0 = pnand %p1122_p13, %p1116_p8 }
 0x4d4   : > { %1126 = shalt.err (!%p1123_p0)
}
 0x4d5   : > { %977 = dma.vmem_to_hbm [thread:$0]  (%p1255_p5), %s854_s19, 256, %s1477_s23, %s836_s24   ;;  %v770_v22 = vpop.permute.xlu1 %769 }
 0x4d6   : > { %s336_s12 = scalar_lea.vmem %s1526_s7, %s1267_s18 }
 0x59b   : > { %v815_v23 = vpop.f32.mrb[4].mxu1 }
 0x59c   : > { %v817_v14 = vpop.f32.mrb[5].mxu1  ;;  %v816_v24 = vadd.f32 %v815_v23, %v770_v22 }
 0x59d   : > { %v819_v25 = vpop.f32.mrb[6].mxu1  ;;  %v818_v28 = vadd.f32 %v817_v14, %v770_v22 }
 0x59e   : > { %v822_v29 = vadd.f32 %v816_v24, %v340_v10  ;;  %v820_v30 = vpop.f32.mrb[7].mxu1 }
 0x59f   : > { %v823_v31 = vadd.f32 %v818_v28, %v341_v12 }
 0x5a0   : > { %824 = vst [vmem:[%s336_s12] sm:$0xff] %v822_v29 }
 0x5a1   : > { %825 = vst [vmem:[%s336_s12 + $0x8] sm:$0xff] %v823_v31 }
 0x5a2 PF: > { %p983_p5 = scmp.ge.s32.totalorder %s1161_s30, 2  ;;  %s873_s15 = sand.u32 1, %s1149_s27  }
 0x5a3   : > { %s874_s19 = scalar_lea.sflag [#allocation3], %s873_s15 }
 0x5a4   : > { %p980_p1 = pnand %p983_p5, %p1259_p6 }
 0x5a6   : > { %1144 = dma.done.wait (!%p980_p1), %s874_s19, 256  }
 0x5a7   : > { %1146 = vsyncadd (!%p980_p1), %s874_s19, 4294967040  ;;  %p19_p2 = scmp.ge.s32.totalorder %s1242_s11, 4   ;;  %s1538_s27 = smov %s1153_s28 }
 0x5a8   : > { %s1539_s28 = smov %s1157_s29  ;;  %s1540_s29 = smov %s1253_s14 }
 0x5a9   : > { %s1541_s30 = smov %s1242_s11  ;;  %21 = sbr.rel (!%p19_p2) target bundleno = 3 (0x3), region = 98 }
 0x5b0   :  { %879 = vsyncpa [#allocation3], 1 }
 0x5b1   :  { %881 = vsyncpa [#allocation3 + $0x1], 1 }

</bundles_post_ra>
